<compile_context>
chip_gen: v5e
topology: v5e:2x2
jax: 0.10.0
libtpu: 0.0.40
codegen_flags: <defaults>
</compile_context>

<pallas_src>
import functools

import jax
import jax.numpy as jnp
from jax.experimental import pallas as pl
from jax.experimental.pallas import tpu as pltpu


def _video_lstm_kernel(x_ref, wih_ref, whh_ref, b_ref, wfc_ref, bfc_ref,
                       out_ref, *, T, BP):
    # x_ref:   (T*BP, D)  bf16, time-major (row t*BP+b is batch b at step t)
    # wih_ref: (D, 4*HP)  bf16   whh_ref: (HP, 4*HP) bf16
    # b_ref:   (1, 4*HP)  f32 (= b_ih + b_hh, gate-aligned & padded)
    # wfc_ref: (HP, D)    bf16   bfc_ref: (1, D) f32
    # out_ref: (T*BP, D)  f32, time-major
    HP = whh_ref.shape[0]

    # (1) Bulk input projection for ALL timesteps: one (T*BP, D) @ (D, 4*HP)
    #     bf16 MXU matmul (f32 accumulate) + a single bias broadcast,
    #     removed from the serial path.
    gx = (jnp.dot(x_ref[...], wih_ref[...], preferred_element_type=jnp.float32)
          + b_ref[...])                       # (T*BP, 4*HP) f32

    # (2) Serial recurrence, fully unrolled (T static & small).  Per step:
    #     one bf16 h @ W_hh MXU matmul + f32 gate elementwise math.
    #     W_hh is read from VMEM inside the dot each step (not held live);
    #     gate slices are 128-lane aligned (HP % 128 == 0); gx slices are
    #     static 8-sublane-aligned contiguous rows.
    h = jnp.zeros((BP, HP), jnp.float32)
    c = jnp.zeros((BP, HP), jnp.float32)
    hs = []
    for t in range(T):
        gates = gx[t * BP:(t + 1) * BP, :] + jnp.dot(
            h.astype(jnp.bfloat16), whh_ref[...],
            preferred_element_type=jnp.float32)
        i_g = jax.nn.sigmoid(gates[:, 0 * HP:1 * HP])
        f_g = jax.nn.sigmoid(gates[:, 1 * HP:2 * HP])
        g_g = jnp.tanh(gates[:, 2 * HP:3 * HP])
        o_g = jax.nn.sigmoid(gates[:, 3 * HP:4 * HP])
        c = f_g * c + i_g * g_g
        h = o_g * jnp.tanh(c)
        hs.append(h)                          # 1 vreg per step; no scratch store

    # (3) FC head hoisted out of the recurrence: concat the T tile-aligned
    #     (BP, HP) blocks and do one (T*BP, HP) @ (HP, D) matmul + bias + one
    #     bulk store.  (D=32 < 128 lanes -> masked store; negligible at this
    #     size, pad D lane-dense from the wrapper if D/T grow.)
    h_all = jnp.concatenate(hs, axis=0).astype(jnp.bfloat16)   # (T*BP, HP)
    y = jnp.dot(h_all, wfc_ref[...], preferred_element_type=jnp.float32) + bfc_ref[...]
    out_ref[...] = y.astype(out_ref.dtype)


@jax.jit
def video_lstm_forward(x, w_ih, w_hh, b_ih, b_hh, w_fc, b_fc):
    """x: (B, T, D) float32 (batch_first, like the PyTorch module). Returns (B, T, D)."""
    B, T, D = x.shape
    H = w_hh.shape[1]                       # w_hh is PyTorch-layout (4H, H)
    HP = ((H + 127) // 128) * 128           # pad hidden to 128-lane boundary
    BP = ((B + 7) // 8) * 8                 # pad batch to f32 sublane tile

    # --- one-time parameter repacking (plain JAX glue, gate-aligned, padded,
    #     bf16 for the MXU operands) ---
    wih_t = jnp.transpose(w_ih).astype(jnp.float32)   # (D, 4H)
    whh_t = jnp.transpose(w_hh).astype(jnp.float32)   # (H, 4H)
    b_comb = (b_ih + b_hh).astype(jnp.float32)        # (4H,)

    wih_p = jnp.zeros((D, 4 * HP), jnp.float32)
    whh_p = jnp.zeros((HP, 4 * HP), jnp.float32)
    b_p = jnp.zeros((1, 4 * HP), jnp.float32)
    for g in range(4):                      # each gate block on a 128-lane boundary
        wih_p = wih_p.at[:, g * HP:g * HP + H].set(wih_t[:, g * H:(g + 1) * H])
        whh_p = whh_p.at[:H, g * HP:g * HP + H].set(whh_t[:, g * H:(g + 1) * H])
        b_p = b_p.at[:, g * HP:g * HP + H].set(b_comb[g * H:(g + 1) * H])
    wfc_p = jnp.zeros((HP, D), jnp.float32).at[:H, :].set(
        jnp.transpose(w_fc).astype(jnp.float32))
    bfc2 = b_fc.reshape(1, D).astype(jnp.float32)

    wih_bf = wih_p.astype(jnp.bfloat16)
    whh_bf = whh_p.astype(jnp.bfloat16)
    wfc_bf = wfc_p.astype(jnp.bfloat16)

    # --- x: pad batch to BP, go time-major, flatten to (T*BP, D), bf16 ---
    xp = jnp.zeros((BP, T, D), jnp.float32).at[:B].set(x.astype(jnp.float32))
    x_tm = jnp.transpose(xp, (1, 0, 2)).reshape(T * BP, D).astype(jnp.bfloat16)

    vmem = pl.BlockSpec(memory_space=pltpu.MemorySpace.VMEM)
    # No grid: everything (<1 MiB) is VMEM-resident on v5e/v6e/v7x.  At real
    # video scale: T-chunked "arbitrary" grid axis with h/c carried in
    # scratch + a leading "parallel" batch axis (v7x megacore), FC per chunk.
    out_flat = pl.pallas_call(
        functools.partial(_video_lstm_kernel, T=T, BP=BP),
        out_shape=jax.ShapeDtypeStruct((T * BP, D), jnp.float32),
        in_specs=[vmem] * 6,
        out_specs=vmem,
        compiler_params=pltpu.CompilerParams(
            vmem_limit_bytes=32 * 1024 * 1024),
    )(x_tm, wih_bf, whh_bf, b_p, wfc_bf, bfc2)

    # (T*BP, D) time-major -> (B, T, D)
    out = jnp.transpose(out_flat.reshape(T, BP, D), (1, 0, 2))[:B]
    return out.astype(x.dtype)


def _reference_forward(x, w_ih, w_hh, b_ih, b_hh, w_fc, b_fc):
    """Pure-JAX f32 reference matching torch.nn.LSTM(batch_first=True) + Linear."""
    B, T, D = x.shape
    H = w_hh.shape[1]
    h = jnp.zeros((B, H), jnp.float32)
    c = jnp.zeros((B, H), jnp.float32)
    outs = []
    for t in range(T):
        gates = x[:, t, :] @ w_ih.T + b_ih + h @ w_hh.T + b_hh
        i = jax.nn.sigmoid(gates[:, 0:H])
        f = jax.nn.sigmoid(gates[:, H:2 * H])
        g = jnp.tanh(gates[:, 2 * H:3 * H])
        o = jax.nn.sigmoid(gates[:, 3 * H:4 * H])
        c = f * c + i * g
        h = o * jnp.tanh(c)
        outs.append(h @ w_fc.T + b_fc)
    return jnp.stack(outs, axis=1)


if __name__ == "__main__":
    # Module hyperparameters (from VideoLSTM.__init__)
    latent_dim, hidden_dim = 32, 64
    B, T = 2, 8

    key = jax.random.PRNGKey(0)
    ks = jax.random.split(key, 8)
    bound = 1.0 / jnp.sqrt(hidden_dim)

    x = jax.random.normal(ks[0], (B, T, latent_dim), dtype=jnp.float32)
    # PyTorch LSTM parameter shapes: weight_ih_l0 (4H, D), weight_hh_l0 (4H, H),
    # bias_ih_l0 (4H,), bias_hh_l0 (4H,); Linear: weight (D, H), bias (D,)
    w_ih = jax.random.uniform(ks[1], (4 * hidden_dim, latent_dim), jnp.float32, -bound, bound)
    w_hh = jax.random.uniform(ks[2], (4 * hidden_dim, hidden_dim), jnp.float32, -bound, bound)
    b_ih = jax.random.uniform(ks[3], (4 * hidden_dim,), jnp.float32, -bound, bound)
    b_hh = jax.random.uniform(ks[4], (4 * hidden_dim,), jnp.float32, -bound, bound)
    w_fc = jax.random.uniform(ks[5], (latent_dim, hidden_dim), jnp.float32, -bound, bound)
    b_fc = jax.random.uniform(ks[6], (latent_dim,), jnp.float32, -bound, bound)

    out = video_lstm_forward(x, w_ih, w_hh, b_ih, b_hh, w_fc, b_fc)
    out = jax.block_until_ready(out)

    ref = _reference_forward(x, w_ih, w_hh, b_ih, b_hh, w_fc, b_fc)
    assert out.shape == (B, T, latent_dim)
    # bf16 MXU inputs (f32 accumulation) vs an all-f32 reference: tolerance
    # relaxed from 1e-5 to 3e-2 per the perf review (observed error ~1e-3).
    err = float(jnp.max(jnp.abs(out - ref)))
    assert err < 3e-2, f"mismatch vs reference: max abs err = {err}"

    print("KERNEL_OK")
</pallas_src>

<mosaic_0001>
module attributes {stable_mosaic.version = 11 : i64} {
  func.func @_video_lstm_kernel(%arg0: memref<64x32xbf16, #tpu.memory_space<vmem>>, %arg1: memref<32x512xbf16, #tpu.memory_space<vmem>>, %arg2: memref<128x512xbf16, #tpu.memory_space<vmem>>, %arg3: memref<1x512xf32, #tpu.memory_space<vmem>>, %arg4: memref<128x32xbf16, #tpu.memory_space<vmem>>, %arg5: memref<1x32xf32, #tpu.memory_space<vmem>>, %arg6: memref<64x32xf32, #tpu.memory_space<vmem>>) attributes {dimension_semantics = [], scalar_prefetch = 0 : i64, scratch_operands = 0 : i64, tpu.core_type = #tpu.core_type<tc>} {
    %c0 = arith.constant 0 : index
    %c0_0 = arith.constant 0 : index
    %0 = vector.load %arg0[%c0, %c0_0] : memref<64x32xbf16, #tpu.memory_space<vmem>>, vector<64x32xbf16>
    %c0_1 = arith.constant 0 : index
    %c0_2 = arith.constant 0 : index
    %1 = vector.load %arg1[%c0_1, %c0_2] : memref<32x512xbf16, #tpu.memory_space<vmem>>, vector<32x512xbf16>
    %cst = arith.constant dense<0.000000e+00> : vector<64x512xf32>
    %2 = tpu.matmul %0, %1, %cst {dimension_numbers = #tpu.dot_dimension_numbers<[1], [0], [0], [1], [0, 0, 1, 1], [], []>} : vector<64x32xbf16>, vector<32x512xbf16>, vector<64x512xf32> -> vector<64x512xf32>
    %c0_3 = arith.constant 0 : index
    %c0_4 = arith.constant 0 : index
    %3 = vector.load %arg3[%c0_3, %c0_4] : memref<1x512xf32, #tpu.memory_space<vmem>>, vector<1x512xf32>
    %4 = vector.broadcast %3 : vector<1x512xf32> to vector<64x512xf32>
    %5 = arith.addf %2, %4 : vector<64x512xf32>
    %cst_5 = arith.constant 0.000000e+00 : f32
    %6 = vector.broadcast %cst_5 : f32 to vector<8x128xf32>
    %cst_6 = arith.constant 0.000000e+00 : f32
    %7 = vector.broadcast %cst_6 : f32 to vector<8x128xf32>
    %8 = vector.extract_strided_slice %5 {offsets = [0, 0], sizes = [8, 512], strides = [1, 1]} : vector<64x512xf32> to vector<8x512xf32>
    %9 = arith.truncf %6 : vector<8x128xf32> to vector<8x128xbf16>
    %c0_7 = arith.constant 0 : index
    %c0_8 = arith.constant 0 : index
    %10 = vector.load %arg2[%c0_7, %c0_8] : memref<128x512xbf16, #tpu.memory_space<vmem>>, vector<128x512xbf16>
    %cst_9 = arith.constant dense<0.000000e+00> : vector<8x512xf32>
    %11 = tpu.matmul %9, %10, %cst_9 {dimension_numbers = #tpu.dot_dimension_numbers<[1], [0], [0], [1], [0, 0, 1, 1], [], []>} : vector<8x128xbf16>, vector<128x512xbf16>, vector<8x512xf32> -> vector<8x512xf32>
    %12 = arith.addf %8, %11 : vector<8x512xf32>
    %13 = vector.extract_strided_slice %12 {offsets = [0, 0], sizes = [8, 128], strides = [1, 1]} : vector<8x512xf32> to vector<8x128xf32>
    %14 = arith.negf %13 : vector<8x128xf32>
    %15 = math.exp %14 : vector<8x128xf32>
    %cst_10 = arith.constant 1.000000e+00 : f32
    %16 = vector.broadcast %cst_10 : f32 to vector<8x128xf32>
    %17 = arith.addf %16, %15 : vector<8x128xf32>
    %18 = arith.divf %16, %17 : vector<8x128xf32>
    %19 = vector.extract_strided_slice %12 {offsets = [0, 128], sizes = [8, 128], strides = [1, 1]} : vector<8x512xf32> to vector<8x128xf32>
    %20 = arith.negf %19 : vector<8x128xf32>
    %21 = math.exp %20 : vector<8x128xf32>
    %cst_11 = arith.constant 1.000000e+00 : f32
    %22 = vector.broadcast %cst_11 : f32 to vector<8x128xf32>
    %23 = arith.addf %22, %21 : vector<8x128xf32>
    %24 = arith.divf %22, %23 : vector<8x128xf32>
    %25 = vector.extract_strided_slice %12 {offsets = [0, 256], sizes = [8, 128], strides = [1, 1]} : vector<8x512xf32> to vector<8x128xf32>
    %26 = math.tanh %25 : vector<8x128xf32>
    %27 = vector.extract_strided_slice %12 {offsets = [0, 384], sizes = [8, 128], strides = [1, 1]} : vector<8x512xf32> to vector<8x128xf32>
    %28 = arith.negf %27 : vector<8x128xf32>
    %29 = math.exp %28 : vector<8x128xf32>
    %cst_12 = arith.constant 1.000000e+00 : f32
    %30 = vector.broadcast %cst_12 : f32 to vector<8x128xf32>
    %31 = arith.addf %30, %29 : vector<8x128xf32>
    %32 = arith.divf %30, %31 : vector<8x128xf32>
    %33 = arith.mulf %24, %7 : vector<8x128xf32>
    %34 = arith.mulf %18, %26 : vector<8x128xf32>
    %35 = arith.addf %33, %34 : vector<8x128xf32>
    %36 = math.tanh %35 : vector<8x128xf32>
    %37 = arith.mulf %32, %36 : vector<8x128xf32>
    %38 = vector.extract_strided_slice %5 {offsets = [8, 0], sizes = [8, 512], strides = [1, 1]} : vector<64x512xf32> to vector<8x512xf32>
    %39 = arith.truncf %37 : vector<8x128xf32> to vector<8x128xbf16>
    %c0_13 = arith.constant 0 : index
    %c0_14 = arith.constant 0 : index
    %40 = vector.load %arg2[%c0_13, %c0_14] : memref<128x512xbf16, #tpu.memory_space<vmem>>, vector<128x512xbf16>
    %cst_15 = arith.constant dense<0.000000e+00> : vector<8x512xf32>
    %41 = tpu.matmul %39, %40, %cst_15 {dimension_numbers = #tpu.dot_dimension_numbers<[1], [0], [0], [1], [0, 0, 1, 1], [], []>} : vector<8x128xbf16>, vector<128x512xbf16>, vector<8x512xf32> -> vector<8x512xf32>
    %42 = arith.addf %38, %41 : vector<8x512xf32>
    %43 = vector.extract_strided_slice %42 {offsets = [0, 0], sizes = [8, 128], strides = [1, 1]} : vector<8x512xf32> to vector<8x128xf32>
    %44 = arith.negf %43 : vector<8x128xf32>
    %45 = math.exp %44 : vector<8x128xf32>
    %cst_16 = arith.constant 1.000000e+00 : f32
    %46 = vector.broadcast %cst_16 : f32 to vector<8x128xf32>
    %47 = arith.addf %46, %45 : vector<8x128xf32>
    %48 = arith.divf %46, %47 : vector<8x128xf32>
    %49 = vector.extract_strided_slice %42 {offsets = [0, 128], sizes = [8, 128], strides = [1, 1]} : vector<8x512xf32> to vector<8x128xf32>
    %50 = arith.negf %49 : vector<8x128xf32>
    %51 = math.exp %50 : vector<8x128xf32>
    %cst_17 = arith.constant 1.000000e+00 : f32
    %52 = vector.broadcast %cst_17 : f32 to vector<8x128xf32>
    %53 = arith.addf %52, %51 : vector<8x128xf32>
    %54 = arith.divf %52, %53 : vector<8x128xf32>
    %55 = vector.extract_strided_slice %42 {offsets = [0, 256], sizes = [8, 128], strides = [1, 1]} : vector<8x512xf32> to vector<8x128xf32>
    %56 = math.tanh %55 : vector<8x128xf32>
    %57 = vector.extract_strided_slice %42 {offsets = [0, 384], sizes = [8, 128], strides = [1, 1]} : vector<8x512xf32> to vector<8x128xf32>
    %58 = arith.negf %57 : vector<8x128xf32>
    %59 = math.exp %58 : vector<8x128xf32>
    %cst_18 = arith.constant 1.000000e+00 : f32
    %60 = vector.broadcast %cst_18 : f32 to vector<8x128xf32>
    %61 = arith.addf %60, %59 : vector<8x128xf32>
    %62 = arith.divf %60, %61 : vector<8x128xf32>
    %63 = arith.mulf %54, %35 : vector<8x128xf32>
    %64 = arith.mulf %48, %56 : vector<8x128xf32>
    %65 = arith.addf %63, %64 : vector<8x128xf32>
    %66 = math.tanh %65 : vector<8x128xf32>
    %67 = arith.mulf %62, %66 : vector<8x128xf32>
    %68 = vector.extract_strided_slice %5 {offsets = [16, 0], sizes = [8, 512], strides = [1, 1]} : vector<64x512xf32> to vector<8x512xf32>
    %69 = arith.truncf %67 : vector<8x128xf32> to vector<8x128xbf16>
    %c0_19 = arith.constant 0 : index
    %c0_20 = arith.constant 0 : index
    %70 = vector.load %arg2[%c0_19, %c0_20] : memref<128x512xbf16, #tpu.memory_space<vmem>>, vector<128x512xbf16>
    %cst_21 = arith.constant dense<0.000000e+00> : vector<8x512xf32>
    %71 = tpu.matmul %69, %70, %cst_21 {dimension_numbers = #tpu.dot_dimension_numbers<[1], [0], [0], [1], [0, 0, 1, 1], [], []>} : vector<8x128xbf16>, vector<128x512xbf16>, vector<8x512xf32> -> vector<8x512xf32>
    %72 = arith.addf %68, %71 : vector<8x512xf32>
    %73 = vector.extract_strided_slice %72 {offsets = [0, 0], sizes = [8, 128], strides = [1, 1]} : vector<8x512xf32> to vector<8x128xf32>
    %74 = arith.negf %73 : vector<8x128xf32>
    %75 = math.exp %74 : vector<8x128xf32>
    %cst_22 = arith.constant 1.000000e+00 : f32
    %76 = vector.broadcast %cst_22 : f32 to vector<8x128xf32>
    %77 = arith.addf %76, %75 : vector<8x128xf32>
    %78 = arith.divf %76, %77 : vector<8x128xf32>
    %79 = vector.extract_strided_slice %72 {offsets = [0, 128], sizes = [8, 128], strides = [1, 1]} : vector<8x512xf32> to vector<8x128xf32>
    %80 = arith.negf %79 : vector<8x128xf32>
    %81 = math.exp %80 : vector<8x128xf32>
    %cst_23 = arith.constant 1.000000e+00 : f32
    %82 = vector.broadcast %cst_23 : f32 to vector<8x128xf32>
    %83 = arith.addf %82, %81 : vector<8x128xf32>
    %84 = arith.divf %82, %83 : vector<8x128xf32>
    %85 = vector.extract_strided_slice %72 {offsets = [0, 256], sizes = [8, 128], strides = [1, 1]} : vector<8x512xf32> to vector<8x128xf32>
    %86 = math.tanh %85 : vector<8x128xf32>
    %87 = vector.extract_strided_slice %72 {offsets = [0, 384], sizes = [8, 128], strides = [1, 1]} : vector<8x512xf32> to vector<8x128xf32>
    %88 = arith.negf %87 : vector<8x128xf32>
    %89 = math.exp %88 : vector<8x128xf32>
    %cst_24 = arith.constant 1.000000e+00 : f32
    %90 = vector.broadcast %cst_24 : f32 to vector<8x128xf32>
    %91 = arith.addf %90, %89 : vector<8x128xf32>
    %92 = arith.divf %90, %91 : vector<8x128xf32>
    %93 = arith.mulf %84, %65 : vector<8x128xf32>
    %94 = arith.mulf %78, %86 : vector<8x128xf32>
    %95 = arith.addf %93, %94 : vector<8x128xf32>
    %96 = math.tanh %95 : vector<8x128xf32>
    %97 = arith.mulf %92, %96 : vector<8x128xf32>
    %98 = vector.extract_strided_slice %5 {offsets = [24, 0], sizes = [8, 512], strides = [1, 1]} : vector<64x512xf32> to vector<8x512xf32>
    %99 = arith.truncf %97 : vector<8x128xf32> to vector<8x128xbf16>
    %c0_25 = arith.constant 0 : index
    %c0_26 = arith.constant 0 : index
    %100 = vector.load %arg2[%c0_25, %c0_26] : memref<128x512xbf16, #tpu.memory_space<vmem>>, vector<128x512xbf16>
    %cst_27 = arith.constant dense<0.000000e+00> : vector<8x512xf32>
    %101 = tpu.matmul %99, %100, %cst_27 {dimension_numbers = #tpu.dot_dimension_numbers<[1], [0], [0], [1], [0, 0, 1, 1], [], []>} : vector<8x128xbf16>, vector<128x512xbf16>, vector<8x512xf32> -> vector<8x512xf32>
    %102 = arith.addf %98, %101 : vector<8x512xf32>
    %103 = vector.extract_strided_slice %102 {offsets = [0, 0], sizes = [8, 128], strides = [1, 1]} : vector<8x512xf32> to vector<8x128xf32>
    %104 = arith.negf %103 : vector<8x128xf32>
    %105 = math.exp %104 : vector<8x128xf32>
    %cst_28 = arith.constant 1.000000e+00 : f32
    %106 = vector.broadcast %cst_28 : f32 to vector<8x128xf32>
    %107 = arith.addf %106, %105 : vector<8x128xf32>
    %108 = arith.divf %106, %107 : vector<8x128xf32>
    %109 = vector.extract_strided_slice %102 {offsets = [0, 128], sizes = [8, 128], strides = [1, 1]} : vector<8x512xf32> to vector<8x128xf32>
    %110 = arith.negf %109 : vector<8x128xf32>
    %111 = math.exp %110 : vector<8x128xf32>
    %cst_29 = arith.constant 1.000000e+00 : f32
    %112 = vector.broadcast %cst_29 : f32 to vector<8x128xf32>
    %113 = arith.addf %112, %111 : vector<8x128xf32>
    %114 = arith.divf %112, %113 : vector<8x128xf32>
    %115 = vector.extract_strided_slice %102 {offsets = [0, 256], sizes = [8, 128], strides = [1, 1]} : vector<8x512xf32> to vector<8x128xf32>
    %116 = math.tanh %115 : vector<8x128xf32>
    %117 = vector.extract_strided_slice %102 {offsets = [0, 384], sizes = [8, 128], strides = [1, 1]} : vector<8x512xf32> to vector<8x128xf32>
    %118 = arith.negf %117 : vector<8x128xf32>
    %119 = math.exp %118 : vector<8x128xf32>
    %cst_30 = arith.constant 1.000000e+00 : f32
    %120 = vector.broadcast %cst_30 : f32 to vector<8x128xf32>
    %121 = arith.addf %120, %119 : vector<8x128xf32>
    %122 = arith.divf %120, %121 : vector<8x128xf32>
    %123 = arith.mulf %114, %95 : vector<8x128xf32>
    %124 = arith.mulf %108, %116 : vector<8x128xf32>
    %125 = arith.addf %123, %124 : vector<8x128xf32>
    %126 = math.tanh %125 : vector<8x128xf32>
    %127 = arith.mulf %122, %126 : vector<8x128xf32>
    %128 = vector.extract_strided_slice %5 {offsets = [32, 0], sizes = [8, 512], strides = [1, 1]} : vector<64x512xf32> to vector<8x512xf32>
    %129 = arith.truncf %127 : vector<8x128xf32> to vector<8x128xbf16>
    %c0_31 = arith.constant 0 : index
    %c0_32 = arith.constant 0 : index
    %130 = vector.load %arg2[%c0_31, %c0_32] : memref<128x512xbf16, #tpu.memory_space<vmem>>, vector<128x512xbf16>
    %cst_33 = arith.constant dense<0.000000e+00> : vector<8x512xf32>
    %131 = tpu.matmul %129, %130, %cst_33 {dimension_numbers = #tpu.dot_dimension_numbers<[1], [0], [0], [1], [0, 0, 1, 1], [], []>} : vector<8x128xbf16>, vector<128x512xbf16>, vector<8x512xf32> -> vector<8x512xf32>
    %132 = arith.addf %128, %131 : vector<8x512xf32>
    %133 = vector.extract_strided_slice %132 {offsets = [0, 0], sizes = [8, 128], strides = [1, 1]} : vector<8x512xf32> to vector<8x128xf32>
    %134 = arith.negf %133 : vector<8x128xf32>
    %135 = math.exp %134 : vector<8x128xf32>
    %cst_34 = arith.constant 1.000000e+00 : f32
    %136 = vector.broadcast %cst_34 : f32 to vector<8x128xf32>
    %137 = arith.addf %136, %135 : vector<8x128xf32>
    %138 = arith.divf %136, %137 : vector<8x128xf32>
    %139 = vector.extract_strided_slice %132 {offsets = [0, 128], sizes = [8, 128], strides = [1, 1]} : vector<8x512xf32> to vector<8x128xf32>
    %140 = arith.negf %139 : vector<8x128xf32>
    %141 = math.exp %140 : vector<8x128xf32>
    %cst_35 = arith.constant 1.000000e+00 : f32
    %142 = vector.broadcast %cst_35 : f32 to vector<8x128xf32>
    %143 = arith.addf %142, %141 : vector<8x128xf32>
    %144 = arith.divf %142, %143 : vector<8x128xf32>
    %145 = vector.extract_strided_slice %132 {offsets = [0, 256], sizes = [8, 128], strides = [1, 1]} : vector<8x512xf32> to vector<8x128xf32>
    %146 = math.tanh %145 : vector<8x128xf32>
    %147 = vector.extract_strided_slice %132 {offsets = [0, 384], sizes = [8, 128], strides = [1, 1]} : vector<8x512xf32> to vector<8x128xf32>
    %148 = arith.negf %147 : vector<8x128xf32>
    %149 = math.exp %148 : vector<8x128xf32>
    %cst_36 = arith.constant 1.000000e+00 : f32
    %150 = vector.broadcast %cst_36 : f32 to vector<8x128xf32>
    %151 = arith.addf %150, %149 : vector<8x128xf32>
    %152 = arith.divf %150, %151 : vector<8x128xf32>
    %153 = arith.mulf %144, %125 : vector<8x128xf32>
    %154 = arith.mulf %138, %146 : vector<8x128xf32>
    %155 = arith.addf %153, %154 : vector<8x128xf32>
    %156 = math.tanh %155 : vector<8x128xf32>
    %157 = arith.mulf %152, %156 : vector<8x128xf32>
    %158 = vector.extract_strided_slice %5 {offsets = [40, 0], sizes = [8, 512], strides = [1, 1]} : vector<64x512xf32> to vector<8x512xf32>
    %159 = arith.truncf %157 : vector<8x128xf32> to vector<8x128xbf16>
    %c0_37 = arith.constant 0 : index
    %c0_38 = arith.constant 0 : index
    %160 = vector.load %arg2[%c0_37, %c0_38] : memref<128x512xbf16, #tpu.memory_space<vmem>>, vector<128x512xbf16>
    %cst_39 = arith.constant dense<0.000000e+00> : vector<8x512xf32>
    %161 = tpu.matmul %159, %160, %cst_39 {dimension_numbers = #tpu.dot_dimension_numbers<[1], [0], [0], [1], [0, 0, 1, 1], [], []>} : vector<8x128xbf16>, vector<128x512xbf16>, vector<8x512xf32> -> vector<8x512xf32>
    %162 = arith.addf %158, %161 : vector<8x512xf32>
    %163 = vector.extract_strided_slice %162 {offsets = [0, 0], sizes = [8, 128], strides = [1, 1]} : vector<8x512xf32> to vector<8x128xf32>
    %164 = arith.negf %163 : vector<8x128xf32>
    %165 = math.exp %164 : vector<8x128xf32>
    %cst_40 = arith.constant 1.000000e+00 : f32
    %166 = vector.broadcast %cst_40 : f32 to vector<8x128xf32>
    %167 = arith.addf %166, %165 : vector<8x128xf32>
    %168 = arith.divf %166, %167 : vector<8x128xf32>
    %169 = vector.extract_strided_slice %162 {offsets = [0, 128], sizes = [8, 128], strides = [1, 1]} : vector<8x512xf32> to vector<8x128xf32>
    %170 = arith.negf %169 : vector<8x128xf32>
    %171 = math.exp %170 : vector<8x128xf32>
    %cst_41 = arith.constant 1.000000e+00 : f32
    %172 = vector.broadcast %cst_41 : f32 to vector<8x128xf32>
    %173 = arith.addf %172, %171 : vector<8x128xf32>
    %174 = arith.divf %172, %173 : vector<8x128xf32>
    %175 = vector.extract_strided_slice %162 {offsets = [0, 256], sizes = [8, 128], strides = [1, 1]} : vector<8x512xf32> to vector<8x128xf32>
    %176 = math.tanh %175 : vector<8x128xf32>
    %177 = vector.extract_strided_slice %162 {offsets = [0, 384], sizes = [8, 128], strides = [1, 1]} : vector<8x512xf32> to vector<8x128xf32>
    %178 = arith.negf %177 : vector<8x128xf32>
    %179 = math.exp %178 : vector<8x128xf32>
    %cst_42 = arith.constant 1.000000e+00 : f32
    %180 = vector.broadcast %cst_42 : f32 to vector<8x128xf32>
    %181 = arith.addf %180, %179 : vector<8x128xf32>
    %182 = arith.divf %180, %181 : vector<8x128xf32>
    %183 = arith.mulf %174, %155 : vector<8x128xf32>
    %184 = arith.mulf %168, %176 : vector<8x128xf32>
    %185 = arith.addf %183, %184 : vector<8x128xf32>
    %186 = math.tanh %185 : vector<8x128xf32>
    %187 = arith.mulf %182, %186 : vector<8x128xf32>
    %188 = vector.extract_strided_slice %5 {offsets = [48, 0], sizes = [8, 512], strides = [1, 1]} : vector<64x512xf32> to vector<8x512xf32>
    %189 = arith.truncf %187 : vector<8x128xf32> to vector<8x128xbf16>
    %c0_43 = arith.constant 0 : index
    %c0_44 = arith.constant 0 : index
    %190 = vector.load %arg2[%c0_43, %c0_44] : memref<128x512xbf16, #tpu.memory_space<vmem>>, vector<128x512xbf16>
    %cst_45 = arith.constant dense<0.000000e+00> : vector<8x512xf32>
    %191 = tpu.matmul %189, %190, %cst_45 {dimension_numbers = #tpu.dot_dimension_numbers<[1], [0], [0], [1], [0, 0, 1, 1], [], []>} : vector<8x128xbf16>, vector<128x512xbf16>, vector<8x512xf32> -> vector<8x512xf32>
    %192 = arith.addf %188, %191 : vector<8x512xf32>
    %193 = vector.extract_strided_slice %192 {offsets = [0, 0], sizes = [8, 128], strides = [1, 1]} : vector<8x512xf32> to vector<8x128xf32>
    %194 = arith.negf %193 : vector<8x128xf32>
    %195 = math.exp %194 : vector<8x128xf32>
    %cst_46 = arith.constant 1.000000e+00 : f32
    %196 = vector.broadcast %cst_46 : f32 to vector<8x128xf32>
    %197 = arith.addf %196, %195 : vector<8x128xf32>
    %198 = arith.divf %196, %197 : vector<8x128xf32>
    %199 = vector.extract_strided_slice %192 {offsets = [0, 128], sizes = [8, 128], strides = [1, 1]} : vector<8x512xf32> to vector<8x128xf32>
    %200 = arith.negf %199 : vector<8x128xf32>
    %201 = math.exp %200 : vector<8x128xf32>
    %cst_47 = arith.constant 1.000000e+00 : f32
    %202 = vector.broadcast %cst_47 : f32 to vector<8x128xf32>
    %203 = arith.addf %202, %201 : vector<8x128xf32>
    %204 = arith.divf %202, %203 : vector<8x128xf32>
    %205 = vector.extract_strided_slice %192 {offsets = [0, 256], sizes = [8, 128], strides = [1, 1]} : vector<8x512xf32> to vector<8x128xf32>
    %206 = math.tanh %205 : vector<8x128xf32>
    %207 = vector.extract_strided_slice %192 {offsets = [0, 384], sizes = [8, 128], strides = [1, 1]} : vector<8x512xf32> to vector<8x128xf32>
    %208 = arith.negf %207 : vector<8x128xf32>
    %209 = math.exp %208 : vector<8x128xf32>
    %cst_48 = arith.constant 1.000000e+00 : f32
    %210 = vector.broadcast %cst_48 : f32 to vector<8x128xf32>
    %211 = arith.addf %210, %209 : vector<8x128xf32>
    %212 = arith.divf %210, %211 : vector<8x128xf32>
    %213 = arith.mulf %204, %185 : vector<8x128xf32>
    %214 = arith.mulf %198, %206 : vector<8x128xf32>
    %215 = arith.addf %213, %214 : vector<8x128xf32>
    %216 = math.tanh %215 : vector<8x128xf32>
    %217 = arith.mulf %212, %216 : vector<8x128xf32>
    %218 = vector.extract_strided_slice %5 {offsets = [56, 0], sizes = [8, 512], strides = [1, 1]} : vector<64x512xf32> to vector<8x512xf32>
    %219 = arith.truncf %217 : vector<8x128xf32> to vector<8x128xbf16>
    %c0_49 = arith.constant 0 : index
    %c0_50 = arith.constant 0 : index
    %220 = vector.load %arg2[%c0_49, %c0_50] : memref<128x512xbf16, #tpu.memory_space<vmem>>, vector<128x512xbf16>
    %cst_51 = arith.constant dense<0.000000e+00> : vector<8x512xf32>
    %221 = tpu.matmul %219, %220, %cst_51 {dimension_numbers = #tpu.dot_dimension_numbers<[1], [0], [0], [1], [0, 0, 1, 1], [], []>} : vector<8x128xbf16>, vector<128x512xbf16>, vector<8x512xf32> -> vector<8x512xf32>
    %222 = arith.addf %218, %221 : vector<8x512xf32>
    %223 = vector.extract_strided_slice %222 {offsets = [0, 0], sizes = [8, 128], strides = [1, 1]} : vector<8x512xf32> to vector<8x128xf32>
    %224 = arith.negf %223 : vector<8x128xf32>
    %225 = math.exp %224 : vector<8x128xf32>
    %cst_52 = arith.constant 1.000000e+00 : f32
    %226 = vector.broadcast %cst_52 : f32 to vector<8x128xf32>
    %227 = arith.addf %226, %225 : vector<8x128xf32>
    %228 = arith.divf %226, %227 : vector<8x128xf32>
    %229 = vector.extract_strided_slice %222 {offsets = [0, 128], sizes = [8, 128], strides = [1, 1]} : vector<8x512xf32> to vector<8x128xf32>
    %230 = arith.negf %229 : vector<8x128xf32>
    %231 = math.exp %230 : vector<8x128xf32>
    %cst_53 = arith.constant 1.000000e+00 : f32
    %232 = vector.broadcast %cst_53 : f32 to vector<8x128xf32>
    %233 = arith.addf %232, %231 : vector<8x128xf32>
    %234 = arith.divf %232, %233 : vector<8x128xf32>
    %235 = vector.extract_strided_slice %222 {offsets = [0, 256], sizes = [8, 128], strides = [1, 1]} : vector<8x512xf32> to vector<8x128xf32>
    %236 = math.tanh %235 : vector<8x128xf32>
    %237 = vector.extract_strided_slice %222 {offsets = [0, 384], sizes = [8, 128], strides = [1, 1]} : vector<8x512xf32> to vector<8x128xf32>
    %238 = arith.negf %237 : vector<8x128xf32>
    %239 = math.exp %238 : vector<8x128xf32>
    %cst_54 = arith.constant 1.000000e+00 : f32
    %240 = vector.broadcast %cst_54 : f32 to vector<8x128xf32>
    %241 = arith.addf %240, %239 : vector<8x128xf32>
    %242 = arith.divf %240, %241 : vector<8x128xf32>
    %243 = arith.mulf %234, %215 : vector<8x128xf32>
    %244 = arith.mulf %228, %236 : vector<8x128xf32>
    %245 = arith.addf %243, %244 : vector<8x128xf32>
    %246 = math.tanh %245 : vector<8x128xf32>
    %247 = arith.mulf %242, %246 : vector<8x128xf32>
    %248 = tpu.concatenate %37, %67, %97, %127, %157, %187, %217, %247 in 0 : vector<8x128xf32>, vector<8x128xf32>, vector<8x128xf32>, vector<8x128xf32>, vector<8x128xf32>, vector<8x128xf32>, vector<8x128xf32>, vector<8x128xf32> -> vector<64x128xf32>
    %249 = arith.truncf %248 : vector<64x128xf32> to vector<64x128xbf16>
    %c0_55 = arith.constant 0 : index
    %c0_56 = arith.constant 0 : index
    %250 = vector.load %arg4[%c0_55, %c0_56] : memref<128x32xbf16, #tpu.memory_space<vmem>>, vector<128x32xbf16>
    %cst_57 = arith.constant dense<0.000000e+00> : vector<64x32xf32>
    %251 = tpu.matmul %249, %250, %cst_57 {dimension_numbers = #tpu.dot_dimension_numbers<[1], [0], [0], [1], [0, 0, 1, 1], [], []>} : vector<64x128xbf16>, vector<128x32xbf16>, vector<64x32xf32> -> vector<64x32xf32>
    %c0_58 = arith.constant 0 : index
    %c0_59 = arith.constant 0 : index
    %252 = vector.load %arg5[%c0_58, %c0_59] : memref<1x32xf32, #tpu.memory_space<vmem>>, vector<1x32xf32>
    %253 = vector.broadcast %252 : vector<1x32xf32> to vector<64x32xf32>
    %254 = arith.addf %251, %253 : vector<64x32xf32>
    %c0_60 = arith.constant 0 : index
    %c0_61 = arith.constant 0 : index
    %255 = vector.load %arg6[%c0_60, %c0_61] : memref<64x32xf32, #tpu.memory_space<vmem>>, vector<64x32xf32>
    tpu.vector_store %arg6[%c0_60, %c0_61], %254 {strides = array<i32>} : memref<64x32xf32, #tpu.memory_space<vmem>>, vector<64x32xf32>,
    return
  }
}

</mosaic_0001>

<bundles_post_ra>
// kernel: video_lstm_forward.1
= control target key start
LH: loop header
LB: loop body
LE: loop exit
PB: predicated region body
PF: predicated region fallthrough
CT: control target
= control target key end

     0   :  { %vm110_vm0 = vcmask 261120   ;;  %s2818_s1 = inlined_call_operand.vmem [shape: bf16[32,512], index: 1, kind: input, shape index: {}]   ;;  %s2819_s0 = inlined_call_operand.vmem [shape: bf16[64,32], index: 0, kind: input, shape index: {}]   ;;  %s2820_s2 = inlined_call_operand.vmem [shape: bf16[128,512], index: 2, kind: input, shape index: {}]   ;;  %s2821_s3 = inlined_call_operand.vmem [shape: f32[1,512], index: 3, kind: input, shape index: {}]   ;;  %s2822_s4 = inlined_call_operand.vmem [shape: bf16[128,32], index: 4, kind: input, shape index: {}]   ;;  %s2823_s5 = inlined_call_operand.vmem [shape: f32[1,32], index: 5, kind: input, shape index: {}]   ;;  %s2824_s6 = inlined_call_operand.vmem [shape: f32[64,32], index: 6, kind: output, shape index: {}]  }
   0x1   :  { %v1537_v0 = vld [vmem:[%s2818_s1 + $0x20] sm:$0xf]  ;;  %v1761_v1 = vld [vmem:[%s2818_s1 + $0x2c] sm:$0xf0]  ;;  %v1545_v2 = vld [vmem:[%s2818_s1 + $0x28] sm:$0xf] }
   0x2   :  { %v1538_v3 = vor.u32 %v1761_v1, %v1537_v0  ;;  %v1762_v4 = vld [vmem:[%s2818_s1 + $0x34] sm:$0xf0]  ;;  %v1521_v5 = vld [vmem:[%s2818_s1] sm:$0xf]  ;;  %v1757_v6 = vld [vmem:[%s2818_s1 + $0xc] sm:$0xf0] }
   0x3   :  { %v1546_v7 = vor.u32 %v1762_v4, %v1545_v2  ;;  %v1529_v8 = vld [vmem:[%s2818_s1 + $0x8] sm:$0xf]  ;;  %v1758_v9 = vld [vmem:[%s2818_s1 + $0x14] sm:$0xf0]  ;;  %v1522_v10 = vor.u32 %v1757_v6, %v1521_v5  ;;  %v1759_v11 = vld [vmem:[%s2818_s1 + $0x24] sm:$0xf] }
   0x4   :  { %1803 = vmatpush.bf16.msra.mxu1 %v1538_v3  ;;  %1804 = vmatpush.bf16.msra.mxu3 %v1538_v3  ;;  %v1539_v12 = vld [vmem:[%s2818_s1 + $0x30] sm:$0xf0]  ;;  %v1530_v13 = vor.u32 %v1758_v9, %v1529_v8  ;;  %v2011_v15 = vld [vmem:[%s2819_s0 + $0x18] sm:$0xff]  ;;  %v1760_v17 = vld [vmem:[%s2818_s1 + $0x2c] sm:$0xf] }
   0x5   :  { %187 = vmatpush.bf16.msra.mxu2 %v1546_v7  ;;  %v2006_v14 = vld [vmem:[%s2819_s0 + $0x10] sm:$0xff]  ;;  %v1542_v16 = vor.u32 %v1759_v11, %v1539_v12  ;;  %v1547_v18 = vld [vmem:[%s2818_s1 + $0x38] sm:$0xf0]  ;;  %129 = vmatpush.bf16.msra.mxu0 %v1538_v3  ;;  %v1755_v20 = vld [vmem:[%s2818_s1 + $0x4] sm:$0xf] }
   0x6   :  { %v1550_v19 = vor.u32 %v1760_v17, %v1547_v18  ;;  %v1523_v21 = vld [vmem:[%s2818_s1 + $0x10] sm:$0xf0]  ;;  %v1681_v22 = vld [vmem:[%s2820_s2 + $0xe0] sm:$0xf]  ;;  %v1793_v23 = vld [vmem:[%s2820_s2 + $0xec] sm:$0xf0] }
   0x7   :  { %v1756_v24 = vld [vmem:[%s2818_s1 + $0xc] sm:$0xf]  ;;  %v1531_v25 = vld [vmem:[%s2818_s1 + $0x18] sm:$0xf0]  ;;  %v2040_v26 = vld [vmem:[%s2819_s0] sm:$0xff]  ;;  %v2042_v27 = vor.u32 %v1793_v23, %v1681_v22  ;;  %v1526_v30 = vor.u32 %v1755_v20, %v1523_v21 }
   0x8   :  { %1805 = vmatpush.bf16.msra.mxu1 %v1522_v10  ;;  %1806 = vmatpush.bf16.msra.mxu3 %v1522_v10  ;;  %v1791_v28 = vld [vmem:[%s2820_s2 + $0xe4] sm:$0xf]  ;;  %v1683_v29 = vld [vmem:[%s2820_s2 + $0xf0] sm:$0xf0]  ;;  %v1665_v31 = vld [vmem:[%s2820_s2 + $0xc0] sm:$0xf]  ;;  %v1534_v34 = vor.u32 %v1756_v24, %v1531_v25 }
   0x9   :  { %188 = vmatpush.bf16.msra.mxu2 %v1530_v13  ;;  %v1789_v32 = vld [vmem:[%s2820_s2 + $0xcc] sm:$0xf0]  ;;  %v1792_v33 = vld [vmem:[%s2820_s2 + $0xec] sm:$0xf]  ;;  %v2060_v35 = vor.u32 %v1791_v28, %v1683_v29  ;;  %v1691_v36 = vld [vmem:[%s2820_s2 + $0xf8] sm:$0xf0]  ;;  %130 = vmatpush.bf16.msra.mxu0 %v1522_v10 }
   0xa   :  { %v2069_v37 = vor.u32 %v1789_v32, %v1665_v31  ;;  %v2071_v38 = vor.u32 %v1792_v33, %v1691_v36  ;;  %v1787_v39 = vld [vmem:[%s2820_s2 + $0xc4] sm:$0xf]  ;;  %v1667_v40 = vld [vmem:[%s2820_s2 + $0xd0] sm:$0xf0]  ;;  %v1649_v41 = vld [vmem:[%s2820_s2 + $0xa0] sm:$0xf] }
   0xb   :  { %1553 = vmatmul.msk.bf16.vlgmr.msra.gmra.mxu1 %vm110_vm0, %v2006_v14  ;;  %1554 = vmatmul.msk.bf16.vlgmr.msra.gmra.mxu3 %vm110_vm0, %v2011_v15  ;;  %v1785_v42 = vld [vmem:[%s2820_s2 + $0xac] sm:$0xf0]  ;;  %v1788_v43 = vld [vmem:[%s2820_s2 + $0xcc] sm:$0xf]  ;;  %v1675_v44 = vld [vmem:[%s2820_s2 + $0xd8] sm:$0xf0]  ;;  %v2095_v45 = vor.u32 %v1787_v39, %v1667_v40 }
   0xc   :  { %158 = vmatpush.bf16.msrb.mxu1 %v1542_v16  ;;  %216 = vmatpush.bf16.msrb.mxu3 %v1550_v19  ;;  %v2099_v46 = vor.u32 %v1785_v42, %v1649_v41  ;;  %v2101_v47 = vor.u32 %v1788_v43, %v1675_v44  ;;  %v1633_v48 = vld [vmem:[%s2820_s2 + $0x80] sm:$0xf]  ;;  %v1783_v49 = vld [vmem:[%s2820_s2 + $0xa4] sm:$0xf]  ;;  %v1651_v50 = vld [vmem:[%s2820_s2 + $0xb0] sm:$0xf0] }
   0xd   :  { %431 = vmatpush.bf16.msrb.mxu2 %v2042_v27  ;;  %551 = vmatpush.bf16.msrb.mxu0 %v2042_v27  ;;  %v1781_v51 = vld [vmem:[%s2820_s2 + $0x8c] sm:$0xf0]  ;;  %v1784_v52 = vld [vmem:[%s2820_s2 + $0xac] sm:$0xf]  ;;  %v1659_v53 = vld [vmem:[%s2820_s2 + $0xb8] sm:$0xf0]  ;;  %v2125_v54 = vor.u32 %v1783_v49, %v1651_v50 }
   0xe   :  { %1559 = vmatmul.msk.bf16.vlgmr.msra.gmra.mxu2 %vm110_vm0, %v2040_v26  ;;  %1551 = vmatmul.msk.bf16.vlgmr.msra.gmra.mxu0 %vm110_vm0, %v2040_v26  ;;  %v2129_v55 = vor.u32 %v1781_v51, %v1633_v48  ;;  %v2131_v56 = vor.u32 %v1784_v52, %v1659_v53  ;;  %v1779_v57 = vld [vmem:[%s2820_s2 + $0x84] sm:$0xf]  ;;  %v1635_v58 = vld [vmem:[%s2820_s2 + $0x90] sm:$0xf0]  ;;  %v1780_v59 = vld [vmem:[%s2820_s2 + $0x8c] sm:$0xf] }
   0xf   :  { %v1643_v60 = vld [vmem:[%s2820_s2 + $0x98] sm:$0xf0]  ;;  %v1617_v61 = vld [vmem:[%s2820_s2 + $0x60] sm:$0xf]  ;;  %v1777_v62 = vld [vmem:[%s2820_s2 + $0x6c] sm:$0xf0]  ;;  %v2153_v63 = vor.u32 %v1779_v57, %v1635_v58 }
  0x10   :  { %159 = vmatpush.bf16.msrb.mxu1 %v1526_v30  ;;  %217 = vmatpush.bf16.msrb.mxu3 %v1534_v34  ;;  %v1752_v0 = vld [vmem:[%s2819_s0 + $0x8] sm:$0xff]  ;;  %v2160_v1 = vor.u32 %v1780_v59, %v1643_v60  ;;  %v2162_v2 = vor.u32 %v1777_v62, %v1617_v61  ;;  %v1601_v3 = vld [vmem:[%s2820_s2 + $0x40] sm:$0xf]  ;;  %v1773_v4 = vld [vmem:[%s2820_s2 + $0x4c] sm:$0xf0] }
  0x11   :  { %432 = vmatpush.bf16.msrb.mxu2 %v2069_v37  ;;  %552 = vmatpush.bf16.msrb.mxu0 %v2069_v37  ;;  %v1775_v5 = vld [vmem:[%s2820_s2 + $0x64] sm:$0xf]  ;;  %v1619_v6 = vld [vmem:[%s2820_s2 + $0x70] sm:$0xf0]  ;;  %v2185_v7 = vor.u32 %v1773_v4, %v1601_v3  ;;  %v1585_v8 = vld [vmem:[%s2820_s2 + $0x20] sm:$0xf] }
  0x12   :  { %v2190_v9 = vor.u32 %v1775_v5, %v1619_v6  ;;  %v1776_v10 = vld [vmem:[%s2820_s2 + $0x6c] sm:$0xf]  ;;  %v1627_v11 = vld [vmem:[%s2820_s2 + $0x78] sm:$0xf0]  ;;  %v1769_v12 = vld [vmem:[%s2820_s2 + $0x2c] sm:$0xf0] }
  0x13   :  { %v2202_v13 = vor.u32 %v1776_v10, %v1627_v11  ;;  %v1771_v16 = vld [vmem:[%s2820_s2 + $0x44] sm:$0xf]  ;;  %v1603_v17 = vld [vmem:[%s2820_s2 + $0x50] sm:$0xf0]  ;;  %v1772_v19 = vld [vmem:[%s2820_s2 + $0x4c] sm:$0xf]  ;;  %v2222_v21 = vor.u32 %v1769_v12, %v1585_v8 }
  0x14   :  { %444 = vmatpush.bf16.msra.mxu1 %v2060_v35  ;;  %470 = vmatpush.bf16.msra.mxu3 %v2071_v38  ;;  %v2211_v18 = vor.u32 %v1771_v16, %v1603_v17  ;;  %v1611_v20 = vld [vmem:[%s2820_s2 + $0x58] sm:$0xf0]  ;;  %v1569_v23 = vld [vmem:[%s2820_s2] sm:$0xf]  ;;  %v1765_v24 = vld [vmem:[%s2820_s2 + $0xc] sm:$0xf0] }
  0x15   :  { %433 = vmatpush.bf16.msrb.mxu2 %v2099_v46  ;;  %553 = vmatpush.bf16.msrb.mxu0 %v2099_v46  ;;  %v2224_v22 = vor.u32 %v1772_v19, %v1611_v20  ;;  %v1689_v25 = vld [vmem:[%s2820_s2 + $0xe8] sm:$0xf]  ;;  %v2242_v28 = vor.u32 %v1765_v24, %v1569_v23  ;;  %v1790_v31 = vld [vmem:[%s2820_s2 + $0xd4] sm:$0xf0]  ;;  %v1767_v36 = vld [vmem:[%s2820_s2 + $0x24] sm:$0xf] }
  0x16   :  { %v1673_v30 = vld [vmem:[%s2820_s2 + $0xc8] sm:$0xf]  ;;  %v1786_v34 = vld [vmem:[%s2820_s2 + $0xb4] sm:$0xf0]  ;;  %v1587_v39 = vld [vmem:[%s2820_s2 + $0x30] sm:$0xf0] }
  0x17   :  { %v2256_v32 = vor.u32 %v1790_v31, %v1673_v30  ;;  %v1657_v33 = vld [vmem:[%s2820_s2 + $0xa8] sm:$0xf]  ;;  %v2275_v40 = vor.u32 %v1767_v36, %v1587_v39  ;;  %v1768_v41 = vld [vmem:[%s2820_s2 + $0x2c] sm:$0xf]  ;;  %v1595_v42 = vld [vmem:[%s2820_s2 + $0x38] sm:$0xf0] }
  0x18   :  { %445 = vmatpush.bf16.msra.mxu1 %v2095_v45  ;;  %471 = vmatpush.bf16.msra.mxu3 %v2101_v47  ;;  %v2284_v43 = vor.u32 %v1786_v34, %v1657_v33  ;;  %v2286_v44 = vor.u32 %v1768_v41, %v1595_v42  ;;  %v1763_v48 = vld [vmem:[%s2820_s2 + $0x4] sm:$0xf]  ;;  %v1571_v49 = vld [vmem:[%s2820_s2 + $0x10] sm:$0xf0]  ;;  %v1641_v50 = vld [vmem:[%s2820_s2 + $0x88] sm:$0xf] }
  0x19   :  { %434 = vmatpush.bf16.msrb.mxu2 %v2129_v55  ;;  %554 = vmatpush.bf16.msrb.mxu0 %v2129_v55  ;;  %v1782_v51 = vld [vmem:[%s2820_s2 + $0x94] sm:$0xf0]  ;;  %v2302_v52 = vor.u32 %v1763_v48, %v1571_v49  ;;  %v1764_v53 = vld [vmem:[%s2820_s2 + $0xc] sm:$0xf]  ;;  %v1579_v57 = vld [vmem:[%s2820_s2 + $0x18] sm:$0xf0] }
  0x1a   :  { %v2311_v58 = vor.u32 %v1764_v53, %v1579_v57  ;;  %v2314_v59 = vor.u32 %v1782_v51, %v1641_v50  ;;  %v1625_v60 = vld [vmem:[%s2820_s2 + $0x68] sm:$0xf]  ;;  %v1778_v61 = vld [vmem:[%s2820_s2 + $0x74] sm:$0xf0]  ;;  %v1937_v12 = vmov 0  }
  0x1b   :  { %1555 = vmatmul.msk.bf16.vlgmr.msrb.gmra.mxu1 %vm110_vm0, %v2040_v26  ;;  %1563 = vmatmul.msk.bf16.vlgmr.msrb.gmra.mxu3 %vm110_vm0, %v2040_v26  ;;  %v1794_v26 = vld [vmem:[%s2820_s2 + $0xf4] sm:$0xf0]  ;;  %v2328_v62 = vor.u32 %v1778_v61, %v1625_v60  ;;  %v1593_v5 = vld [vmem:[%s2820_s2 + $0x28] sm:$0xf] }
  0x1c   :  { %446 = vmatpush.bf16.msra.mxu1 %v2125_v54  ;;  %472 = vmatpush.bf16.msra.mxu3 %v2131_v56  ;;  %v2245_v29 = vor.u32 %v1794_v26, %v1689_v25  ;;  %v1774_v3 = vld [vmem:[%s2820_s2 + $0x54] sm:$0xf0]  ;;  %v40_v25 = vld [vmem:[%s2821_s3] sm:$0xf] }
  0x1d   :  { %435 = vmatpush.bf16.msrb.mxu2 %v2162_v2  ;;  %555 = vmatpush.bf16.msrb.mxu0 %v2162_v2  ;;  %v1770_v6 = vld [vmem:[%s2820_s2 + $0x34] sm:$0xf0]  ;;  %v2434_v26 = vperm.slane %v40_v25, 2  ;;  %v43_v31 = vperm.slane %v40_v25, 1  ;;  %v45_v41 = vperm.slane %v40_v25, 3 }
  0x1e   :  { %1560 = vmatmul.msk.bf16.gmra.mxu2 %vm110_vm0, %v1752_v0  ;;  %1552 = vmatmul.msk.bf16.gmra.mxu0 %vm110_vm0, %v1752_v0  ;;  %v2358_v8 = vor.u32 %v1770_v6, %v1593_v5  ;;  %v1766_v10 = vld [vmem:[%s2820_s2 + $0x14] sm:$0xf0] }
  0x20   :  { %447 = vmatpush.bf16.msra.mxu1 %v2153_v63  ;;  %473 = vmatpush.bf16.msra.mxu3 %v2160_v1 }
  0x21   :  { %436 = vmatpush.bf16.msrb.mxu2 %v2185_v7  ;;  %556 = vmatpush.bf16.msrb.mxu0 %v2185_v7 }
  0x24   :  { %448 = vmatpush.bf16.msra.mxu1 %v2190_v9  ;;  %474 = vmatpush.bf16.msra.mxu3 %v2202_v13 }
  0x25   :  { %437 = vmatpush.bf16.msrb.mxu2 %v2222_v21  ;;  %557 = vmatpush.bf16.msrb.mxu0 %v2222_v21 }
  0x28   :  { %449 = vmatpush.bf16.msra.mxu1 %v2211_v18  ;;  %475 = vmatpush.bf16.msra.mxu3 %v2224_v22 }
  0x29   :  { %438 = vmatpush.bf16.msrb.mxu2 %v2242_v28  ;;  %558 = vmatpush.bf16.msrb.mxu0 %v2242_v28 }
  0x2b   :  { %1556 = vmatmul.msk.bf16.gmra.mxu1 %vm110_vm0, %v1752_v0  ;;  %1564 = vmatmul.msk.bf16.gmra.mxu3 %vm110_vm0, %v1752_v0  ;;  %v1609_v0 = vld [vmem:[%s2820_s2 + $0x48] sm:$0xf] }
  0x2c   :  { %450 = vmatpush.bf16.msra.mxu1 %v2275_v40  ;;  %476 = vmatpush.bf16.msra.mxu3 %v2286_v44  ;;  %v2340_v4 = vor.u32 %v1774_v3, %v1609_v0 }
  0x2d   :  { %457 = vmatpush.bf16.msra.mxu2 %v2245_v29  ;;  %671 = vmatpush.bf16.msra.mxu0 %v2042_v27 }
  0x2e   :  { %1561 = vmatmul.msk.bf16.gmra.mxu2 %vm110_vm0, %v2006_v14 }
  0x30   :  { %451 = vmatpush.bf16.msra.mxu1 %v2302_v52  ;;  %477 = vmatpush.bf16.msra.mxu3 %v2311_v58 }
  0x31   :  { %458 = vmatpush.bf16.msra.mxu2 %v2256_v32  ;;  %672 = vmatpush.bf16.msra.mxu0 %v2069_v37 }
  0x34   :  { %564 = vmatpush.bf16.msrb.mxu1 %v2060_v35  ;;  %590 = vmatpush.bf16.msrb.mxu3 %v2071_v38 }
  0x35   :  { %459 = vmatpush.bf16.msra.mxu2 %v2284_v43  ;;  %673 = vmatpush.bf16.msra.mxu0 %v2099_v46 }
  0x38   :  { %565 = vmatpush.bf16.msrb.mxu1 %v2095_v45  ;;  %591 = vmatpush.bf16.msrb.mxu3 %v2101_v47 }
  0x39   :  { %460 = vmatpush.bf16.msra.mxu2 %v2314_v59  ;;  %674 = vmatpush.bf16.msra.mxu0 %v2129_v55 }
  0x3b   :  { %1557 = vmatmul.msk.bf16.gmra.mxu1 %vm110_vm0, %v2006_v14  ;;  %1565 = vmatmul.msk.bf16.gmra.mxu3 %vm110_vm0, %v2006_v14  ;;  %v1577_v14 = vld [vmem:[%s2820_s2 + $0x8] sm:$0xf] }
  0x3c   :  { %566 = vmatpush.bf16.msrb.mxu1 %v2125_v54  ;;  %592 = vmatpush.bf16.msrb.mxu3 %v2131_v56  ;;  %v2370_v11 = vor.u32 %v1766_v10, %v1577_v14 }
  0x3d   :  { %461 = vmatpush.bf16.msra.mxu2 %v2328_v62  ;;  %675 = vmatpush.bf16.msra.mxu0 %v2162_v2 }
  0x3e   :  { %1562 = vmatmul.msk.bf16.gmra.mxu2 %vm110_vm0, %v2011_v15 }
  0x40   :  { %567 = vmatpush.bf16.msrb.mxu1 %v2153_v63  ;;  %593 = vmatpush.bf16.msrb.mxu3 %v2160_v1 }
  0x41   :  { %462 = vmatpush.bf16.msra.mxu2 %v2340_v4  ;;  %676 = vmatpush.bf16.msra.mxu0 %v2185_v7 }
  0x44   :  { %568 = vmatpush.bf16.msrb.mxu1 %v2190_v9  ;;  %594 = vmatpush.bf16.msrb.mxu3 %v2202_v13 }
  0x45   :  { %463 = vmatpush.bf16.msra.mxu2 %v2358_v8  ;;  %677 = vmatpush.bf16.msra.mxu0 %v2222_v21 }
  0x48   :  { %569 = vmatpush.bf16.msrb.mxu1 %v2211_v18  ;;  %595 = vmatpush.bf16.msrb.mxu3 %v2224_v22 }
  0x49   :  { %464 = vmatpush.bf16.msra.mxu2 %v2370_v11  ;;  %678 = vmatpush.bf16.msra.mxu0 %v2242_v28 }
  0x4b   :  { %1558 = vmatmul.msk.bf16.gmra.mxu1 %vm110_vm0, %v2011_v15  ;;  %1566 = vmatmul.msk.bf16.gmra.mxu3 %vm110_vm0, %v2011_v15 }
  0x4c   :  { %570 = vmatpush.bf16.msrb.mxu1 %v2275_v40  ;;  %596 = vmatpush.bf16.msrb.mxu3 %v2286_v44 }
  0x4e   :  { %439 = vmatmul.bf16.vlgmr.msrb.gmra.mxu2 %v1937_v12 }
  0x4f   :  { %577 = vmatpush.bf16.msrb.mxu2 %v2245_v29 }
  0x50   :  { %571 = vmatpush.bf16.msrb.mxu1 %v2302_v52  ;;  %597 = vmatpush.bf16.msrb.mxu3 %v2311_v58 }
  0x53   :  { %578 = vmatpush.bf16.msrb.mxu2 %v2256_v32 }
  0x57   :  { %579 = vmatpush.bf16.msrb.mxu2 %v2284_v43 }
  0x5b   :  { %580 = vmatpush.bf16.msrb.mxu2 %v2314_v59  ;;  %452 = vmatmul.bf16.vlgmr.msra.gmra.mxu1 %v1937_v12 }
  0x5c   :  { %478 = vmatmul.bf16.vlgmr.msra.gmra.mxu3 %v1937_v12  ;;  %684 = vmatpush.bf16.msra.mxu1 %v2060_v35 }
  0x5d   :  { %710 = vmatpush.bf16.msra.mxu3 %v2071_v38 }
  0x5e   :  { %465 = vmatmul.bf16.vlgmr.msra.gmra.mxu2 %v1937_v12 }
  0x5f   :  { %581 = vmatpush.bf16.msrb.mxu2 %v2328_v62 }
  0x60   :  { %685 = vmatpush.bf16.msra.mxu1 %v2095_v45 }
  0x61   :  { %711 = vmatpush.bf16.msra.mxu3 %v2101_v47 }
  0x63   :  { %582 = vmatpush.bf16.msrb.mxu2 %v2340_v4 }
  0x64   :  { %686 = vmatpush.bf16.msra.mxu1 %v2125_v54 }
  0x65   :  { %712 = vmatpush.bf16.msra.mxu3 %v2131_v56 }
  0x67   :  { %583 = vmatpush.bf16.msrb.mxu2 %v2358_v8 }
  0x68   :  { %687 = vmatpush.bf16.msra.mxu1 %v2153_v63 }
  0x69   :  { %713 = vmatpush.bf16.msra.mxu3 %v2160_v1 }
  0x6b   :  { %584 = vmatpush.bf16.msrb.mxu2 %v2370_v11 }
  0x6c   :  { %688 = vmatpush.bf16.msra.mxu1 %v2190_v9 }
  0x6d   :  { %714 = vmatpush.bf16.msra.mxu3 %v2202_v13 }
  0x6f   :  { %697 = vmatpush.bf16.msra.mxu2 %v2245_v29 }
  0x70   :  { %689 = vmatpush.bf16.msra.mxu1 %v2211_v18 }
  0x71   :  { %715 = vmatpush.bf16.msra.mxu3 %v2224_v22 }
  0x73   :  { %698 = vmatpush.bf16.msra.mxu2 %v2256_v32 }
  0x74   :  { %690 = vmatpush.bf16.msra.mxu1 %v2275_v40 }
  0x75   :  { %716 = vmatpush.bf16.msra.mxu3 %v2286_v44 }
  0x77   :  { %699 = vmatpush.bf16.msra.mxu2 %v2284_v43 }
  0x78   :  { %691 = vmatpush.bf16.msra.mxu1 %v2302_v52 }
  0x79   :  { %717 = vmatpush.bf16.msra.mxu3 %v2311_v58 }
  0x7b   :  { %700 = vmatpush.bf16.msra.mxu2 %v2314_v59 }
  0x7f   :  { %701 = vmatpush.bf16.msra.mxu2 %v2328_v62 }
  0x83   :  { %702 = vmatpush.bf16.msra.mxu2 %v2340_v4 }
  0x87   :  { %703 = vmatpush.bf16.msra.mxu2 %v2358_v8 }
  0x88   :  { %v2419_v15 = vpop.f32.mrf.mxu1 }
  0x89   :  { %2825 = vst [vmem:[#allocation2_spill] sm:$0xff] %v2419_v15 }
  0x8b   :  { %704 = vmatpush.bf16.msra.mxu2 %v2370_v11 }
  0x8e   :  { %v2421_v16 = vpop.f32.mrf.mxu3 }
  0x8f   :  { %2826 = vst [vmem:[#allocation3_spill] sm:$0xff] %v2421_v16 }
  0x90   :  { %v2425_v19 = vpop.f32.mrf.mxu1 }
  0x91   :  { %v2423_v17 = vpop.f32.mrf.mxu2  ;;  %2827 = vst [vmem:[#allocation4_spill] sm:$0xff] %v2425_v19  ;;  %v132_v19 = vpop.f32.mrf.mxu0 }
  0x96   :  { %v2427_v20 = vpop.f32.mrf.mxu3 }
  0x97   :  { %2828 = vst [vmem:[#allocation5_spill] sm:$0xff] %v2427_v20 }
  0x98   :  { %v161_v24 = vpop.f32.mrf.mxu1 }
  0x99   :  { %v2429_v23 = vpop.f32.mrf.mxu2 }
  0x9e   :  { %v219_v30 = vpop.f32.mrf.mxu3 }
  0xa0   :  { %v163_v36 = vpop.f32.mrf.mxu1 }
  0xa1   :  { %v195_v33 = vpop.f32.mrf.mxu2  ;;  %v2439_v39 = vadd.f32 %v163_v36, %v43_v31 }
  0xa2   :  { %v2437_v34 = vadd.f32 %v195_v33, %v2434_v26 }
  0xa4   :  { %2829 = vst [vmem:[#allocation6_spill] sm:$0xff] %v2437_v34 }
  0xa6   :  { %v221_v42 = vpop.f32.mrf.mxu3 }
  0xa7   :  { %v2441_v49 = vadd.f32 %v221_v42, %v45_v41 }
  0xa8   :  { %v166_v51 = vpop.f32.mrf.mxu1 }
  0xa9   :  { %v197_v48 = vpop.f32.mrf.mxu2  ;;  %v2446_v53 = vadd.f32 %v166_v51, %v43_v31 }
  0xaa   :  { %v2444_v50 = vadd.f32 %v197_v48, %v2434_v26 }
  0xac   :  { %2830 = vst [vmem:[#allocation7_spill] sm:$0xff] %v2444_v50 }
  0xae   :  { %v224_v57 = vpop.f32.mrf.mxu3 }
  0xaf   :  { %v2448_v61 = vadd.f32 %v224_v57, %v45_v41 }
  0xb0   :  { %v168_v3 = vpop.f32.mrf.mxu1 }
  0xb1   :  { %v200_v60 = vpop.f32.mrf.mxu2  ;;  %v2453_v5 = vadd.f32 %v168_v3, %v43_v31 }
  0xb2   :  { %v2451_v0 = vadd.f32 %v200_v60, %v2434_v26 }
  0xb3   :  { %2832 = vst [vmem:[#allocation9_spill] sm:$0xff] %v2453_v5 }
  0xb4   :  { %2831 = vst [vmem:[#allocation8_spill] sm:$0xff] %v2451_v0  ;;  %v2476_v0 = vperm.slane %v40_v25, 0 }
  0xb6   :  { %v226_v6 = vpop.f32.mrf.mxu3 }
  0xb7   :  { %v2455_v10 = vadd.f32 %v226_v6, %v45_v41 }
  0xb8   :  { %v171_v33 = vpop.f32.mrf.mxu1 }
  0xb9   :  { %v202_v14 = vpop.f32.mrf.mxu2  ;;  %2833 = vst [vmem:[#allocation10_spill] sm:$0xff] %v2455_v10  ;;  %v2460_v36 = vadd.f32 %v171_v33, %v43_v31  ;;  %v220_v10 = vadd.f32 %v219_v30, %v45_v41  ;;  %v191_v30 = vadd.f32 %v2423_v17, %v2434_v26 }
  0xba   :  { %v2458_v12 = vadd.f32 %v202_v14, %v2434_v26 }
  0xbb   :  { %2835 = vst [vmem:[#allocation12_spill] sm:$0xff] %v2460_v36 }
  0xbc   :  { %2834 = vst [vmem:[#allocation11_spill] sm:$0xff] %v2458_v12 }
  0xbe   :  { %v229_v42 = vpop.f32.mrf.mxu3 }
  0xbf   :  { %v2462_v51 = vadd.f32 %v229_v42, %v45_v41  ;;  %v133_v42 = vadd.f32 %v132_v19, %v2476_v0 }
  0xc0   :  { %v173_v60 = vpop.f32.mrf.mxu1 }
  0xc1   :  { %v205_v48 = vpop.f32.mrf.mxu2  ;;  %2836 = vst [vmem:[#allocation13_spill] sm:$0xff] %v2462_v51  ;;  %v2467_v3 = vadd.f32 %v173_v60, %v43_v31 }
  0xc2   :  { %v2465_v57 = vadd.f32 %v205_v48, %v2434_v26 }
  0xc3   :  { %2838 = vst [vmem:[#allocation15_spill] sm:$0xff] %v2467_v3 }
  0xc4   :  { %2837 = vst [vmem:[#allocation14_spill] sm:$0xff] %v2465_v57 }
  0xc6   :  { %v231_v20 = vpop.f32.mrf.mxu3 }
  0xc7   :  { %v2469_v6 = vadd.f32 %v231_v20, %v45_v41 }
  0xc8   :  { %v176_v12 = vpop.f32.mrf.mxu1 }
  0xc9   :  { %v207_v16 = vpop.f32.mrf.mxu2  ;;  %2839 = vst [vmem:[#allocation16_spill] sm:$0xff] %v2469_v6  ;;  %v2474_v33 = vadd.f32 %v176_v12, %v43_v31 }
  0xca   :  { %v2472_v14 = vadd.f32 %v207_v16, %v2434_v26 }
  0xcb   :  { %2841 = vst [vmem:[#allocation18_spill] sm:$0xff] %v2474_v33 }
  0xcc   :  { %2840 = vst [vmem:[#allocation17_spill] sm:$0xff] %v2472_v14  ;;  %v162_v14 = vadd.f32 %v161_v24, %v43_v31 }
  0xce   :  { %v234_v48 = vpop.f32.mrf.mxu3 }
  0xcf   :  { %v2479_v57 = vadd.f32 %v234_v48, %v45_v41 }
  0xd0   :  { %v178_v51 = vpop.f32.mrf.mxu1 }
  0xd1   :  { %2842 = vst [vmem:[#allocation19_spill] sm:$0xff] %v2479_v57  ;;  %v440_v60 = vpop.f32.mrf.mxu2  ;;  %v2481_v36 = vadd.f32 %v178_v51, %v43_v31 }
  0xd2   :  { %v483_v3 = vadd.f32 %v440_v60, %v133_v42 }
  0xd3   :  { %2843 = vst [vmem:[#allocation20_spill] sm:$0xff] %v2481_v36 }
  0xd4   :  { %v1695_v20 = vmul.f32 -1.442695, %v483_v3 }
  0xd6   :  { %1809 = vpow2.f32 %v1695_v20  ;;  %v236_v16 = vpop.f32.mrf.mxu3 }
  0xd7   :  { %v2483_v6 = vadd.f32 %v236_v16, %v45_v41 }
  0xd8   :  { %v453_v33 = vpop.f32.mrf.mxu1 }
  0xd9   :  { %2844 = vst [vmem:[#allocation21_spill] sm:$0xff] %v2483_v6  ;;  %v442_v12 = vpop.f32.mrf.mxu2  ;;  %v484_v25 = vadd.f32 %v453_v33, %v162_v14 }
  0xdb   :  { %v1696_v19 = vmul.f32 -1.442695, %v484_v25 }
  0xdc   :  { %v1810_v15 = vpop.eup %1809 }
  0xdd   :  { %v490_v50 = vadd.f32 1.0, %v1810_v15 }
  0xdf   :  { %1811 = vrcp.f32 %v490_v50  ;;  %v479_v48 = vpop.f32.mrf.mxu3  ;;  %vm496_vm1 = vweird.f32 %v490_v50 }
  0xe0   :  { %1813 = vpow2.f32 %v1696_v19  ;;  %v486_v60 = vadd.f32 %v479_v48, %v220_v10  ;;  %v455_v51 = vpop.f32.mrf.mxu1 }
  0xe1   :  { %v466_v42 = vpop.f32.mrf.mxu2  ;;  %v500_v51 = vand.u32 2147483647, %v490_v50 }
  0xe2   :  { %v1697_v36 = vmul.f32 -1.442695, %v486_v60  ;;  %v485_v10 = vadd.f32 %v466_v42, %v191_v30 }
  0xe3   :  { %vm501_vm6 = vcmp.eq.f32.partialorder %v500_v51, 8.507059e+37 }
  0xe4   :  { %1815 = vpow2.f32 %v1697_v36  ;;  %v502_v36 = vand.u32 2147483648, %v490_v50 }
  0xe5   :  { %v1812_v3 = vpop.eup %1811 }
  0xe6   :  { %v1814_v20 = vpop.eup %1813  ;;  %v492_v24 = vmul.f32 %v1812_v3, %v490_v50  ;;  %vm497_vm2 = vweird.f32 %v1812_v3 }
  0xe7   :  { %v509_v31 = vadd.f32 1.0, %v1814_v20  ;;  %v481_v12 = vpop.f32.mrf.mxu3  ;;  %vm498_vm3 = vmor %vm496_vm1, %vm497_vm2 }
  0xe8   :  { %v493_v16 = vsub.f32 1.0, %v492_v24 }
  0xe9   :  { %1817 = vrcp.f32 %v509_v31  ;;  %v468_v14 = vpop.f32.mrf.mxu2  ;;  %v521_v20 = vand.u32 2147483648, %v509_v31  ;;  %vm515_vm5 = vweird.f32 %v509_v31 }
  0xea   :  { %v1816_v33 = vpop.eup %1815  ;;  %v494_v15 = vmul.f32 %v1812_v3, %v493_v16  ;;  %v519_v14 = vand.u32 2147483647, %v509_v31 }
  0xeb   :  { %v529_v25 = vadd.f32 1.0, %v1816_v33  ;;  %v503_v33 = vor.u32 1.1754944e-38, %v502_v36  ;;  %v522_v30 = vor.u32 1.1754944e-38, %v521_v20 }
  0xec   :  { %v495_v48 = vadd.f32 %v1812_v3, %v494_v15  ;;  %vm520_vm8 = vcmp.eq.f32.partialorder %v519_v14, 8.507059e+37 }
  0xed   :  { %1819 = vrcp.f32 %v529_v25  ;;  %vm535_vm10 = vweird.f32 %v529_v25 }
  0xee   :  { %1821 = vtanh.f32 %v485_v10  ;;  %v499_v16 = vsel %vm498_vm3, %v1812_v3, %v495_v48  ;;  %v539_v48 = vand.u32 2147483647, %v529_v25 }
  0xef   :  { %v1818_v41 = vpop.eup %1817  ;;  %v504_v15 = vsel %vm501_vm6, %v503_v33, %v499_v16 }
  0xf0   :  { %v511_v19 = vmul.f32 %v1818_v41, %v509_v31  ;;  %vm516_vm4 = vweird.f32 %v1818_v41  ;;  %v541_v31 = vand.u32 2147483648, %v529_v25  ;;  %vm540_vm12 = vcmp.eq.f32.partialorder %v539_v48, 8.507059e+37 }
  0xf1   :  { %vm517_vm7 = vmor %vm515_vm5, %vm516_vm4 }
  0xf2   :  { %v512_v60 = vsub.f32 1.0, %v511_v19  ;;  %v542_v51 = vor.u32 1.1754944e-38, %v541_v31 }
  0xf3   :  { %v1820_v24 = vpop.eup %1819 }
  0xf4   :  { %v513_v12 = vmul.f32 %v1818_v41, %v512_v60  ;;  %v531_v17 = vmul.f32 %v1820_v24, %v529_v25  ;;  %v1822_v50 = vpop.eup %1821  ;;  %vm536_vm9 = vweird.f32 %v1820_v24 }
  0xf5   :  { %v546_v34 = vmul.f32 %v1822_v50, %v504_v15  ;;  %vm537_vm11 = vmor %vm535_vm10, %vm536_vm9 }
  0xf6   :  { %v514_v42 = vadd.f32 %v1818_v41, %v513_v12  ;;  %v532_v6 = vsub.f32 1.0, %v531_v17 }
  0xf8   :  { %v518_v57 = vsel %vm517_vm7, %v1818_v41, %v514_v42  ;;  %v533_v5 = vmul.f32 %v1820_v24, %v532_v6 }
  0xf9   :  { %v523_v19 = vsel %vm520_vm8, %v522_v30, %v518_v57 }
  0xfa   :  { %v545_v10 = vmul.f32 0.0, %v523_v19  ;;  %v534_v3 = vadd.f32 %v1820_v24, %v533_v5 }
  0xfc   :  { %v2487_v60 = vadd.f32 %v546_v34, %v545_v10  ;;  %v538_v36 = vsel %vm537_vm11, %v1820_v24, %v534_v3  ;;  %v134_v34 = vpop.f32.mrf.mxu0 }
  0xfd   :  { %v543_v20 = vsel %vm540_vm12, %v542_v51, %v538_v36  ;;  %v135_v25 = vadd.f32 %v134_v34, %v2476_v0 }
  0xfe   :  { %1823 = vtanh.f32 %v2487_v60 }
 0x104   :  { %v1824_v41 = vpop.eup %1823  ;;  %v2526_v5 = vpop.f32.mrf.mxu0 }
 0x105   :  { %v2490_v12 = vmul.f32 %v1824_v41, %v543_v20 }
 0x107   :  { %v550_v57 = vpack.c.bf16 %v2490_v12, %v2490_v12 }
 0x109   :  { %559 = vmatmul.bf16.vlgmr.msrb.gmra.mxu0 %v550_v57  ;;  %572 = vmatmul.bf16.vlgmr.msrb.gmra.mxu1 %v550_v57 }
 0x10a   :  { %585 = vmatmul.bf16.vlgmr.msrb.gmra.mxu2 %v550_v57  ;;  %598 = vmatmul.bf16.vlgmr.msrb.gmra.mxu3 %v550_v57  ;;  %v193_v57 = vadd.f32 %v2429_v23, %v2434_v26 }
 0x10b   :  { %791 = vmatpush.bf16.msrb.mxu0 %v2042_v27  ;;  %804 = vmatpush.bf16.msrb.mxu1 %v2060_v35 }
 0x10c   :  { %817 = vmatpush.bf16.msrb.mxu2 %v2245_v29  ;;  %830 = vmatpush.bf16.msrb.mxu3 %v2071_v38  ;;  %v2528_v6 = vpop.f32.mrf.mxu0 }
 0x10f   :  { %792 = vmatpush.bf16.msrb.mxu0 %v2069_v37  ;;  %805 = vmatpush.bf16.msrb.mxu1 %v2095_v45 }
 0x110   :  { %818 = vmatpush.bf16.msrb.mxu2 %v2256_v32  ;;  %831 = vmatpush.bf16.msrb.mxu3 %v2101_v47 }
 0x113   :  { %793 = vmatpush.bf16.msrb.mxu0 %v2099_v46  ;;  %806 = vmatpush.bf16.msrb.mxu1 %v2125_v54 }
 0x114   :  { %819 = vmatpush.bf16.msrb.mxu2 %v2284_v43  ;;  %832 = vmatpush.bf16.msrb.mxu3 %v2131_v56 }
 0x117   :  { %794 = vmatpush.bf16.msrb.mxu0 %v2129_v55  ;;  %807 = vmatpush.bf16.msrb.mxu1 %v2153_v63 }
 0x118   :  { %820 = vmatpush.bf16.msrb.mxu2 %v2314_v59  ;;  %833 = vmatpush.bf16.msrb.mxu3 %v2160_v1 }
 0x11b   :  { %795 = vmatpush.bf16.msrb.mxu0 %v2162_v2  ;;  %808 = vmatpush.bf16.msrb.mxu1 %v2190_v9 }
 0x11c   :  { %821 = vmatpush.bf16.msrb.mxu2 %v2328_v62  ;;  %834 = vmatpush.bf16.msrb.mxu3 %v2202_v13 }
 0x11f   :  { %796 = vmatpush.bf16.msrb.mxu0 %v2185_v7  ;;  %809 = vmatpush.bf16.msrb.mxu1 %v2211_v18 }
 0x120   :  { %822 = vmatpush.bf16.msrb.mxu2 %v2340_v4  ;;  %835 = vmatpush.bf16.msrb.mxu3 %v2224_v22 }
 0x123   :  { %797 = vmatpush.bf16.msrb.mxu0 %v2222_v21  ;;  %810 = vmatpush.bf16.msrb.mxu1 %v2275_v40 }
 0x124   :  { %823 = vmatpush.bf16.msrb.mxu2 %v2358_v8  ;;  %836 = vmatpush.bf16.msrb.mxu3 %v2286_v44 }
 0x127   :  { %798 = vmatpush.bf16.msrb.mxu0 %v2242_v28  ;;  %811 = vmatpush.bf16.msrb.mxu1 %v2302_v52 }
 0x128   :  { %824 = vmatpush.bf16.msrb.mxu2 %v2370_v11  ;;  %837 = vmatpush.bf16.msrb.mxu3 %v2311_v58 }
 0x186   :  { %v560_v24 = vpop.f32.mrf.mxu0  ;;  %v573_v16 = vpop.f32.mrf.mxu1 }
 0x187   :  { %v603_v14 = vadd.f32 %v560_v24, %v135_v25  ;;  %v604_v33 = vadd.f32 %v573_v16, %v2439_v39 }
 0x189   :  { %v1698_v17 = vmul.f32 -1.442695, %v603_v14  ;;  %v1699_v42 = vmul.f32 -1.442695, %v604_v33 }
 0x18b   :  { %1825 = vpow2.f32 %v1698_v17 }
 0x18c   :  { %1827 = vpow2.f32 %v1699_v42 }
 0x18d   :  { %v586_v30 = vpop.f32.mrf.mxu2  ;;  %v599_v15 = vpop.f32.mrf.mxu3 }
 0x18e   :  { %v606_v50 = vadd.f32 %v599_v15, %v2441_v49  ;;  %v562_v19 = vpop.f32.mrf.mxu0  ;;  %v575_v10 = vpop.f32.mrf.mxu1  ;;  %v605_v24 = vadd.f32 %v586_v30, %v193_v57 }
 0x190   :  { %v1700_v3 = vmul.f32 -1.442695, %v606_v50 }
 0x191   :  { %v1826_v31 = vpop.eup %1825 }
 0x192   :  { %v1828_v48 = vpop.eup %1827  ;;  %v610_v36 = vadd.f32 1.0, %v1826_v31  ;;  %1829 = vpow2.f32 %v1700_v3 }
 0x193   :  { %v629_v51 = vadd.f32 1.0, %v1828_v48 }
 0x194   :  { %1831 = vrcp.f32 %v610_v36  ;;  %v622_v42 = vand.u32 2147483648, %v610_v36  ;;  %v620_v19 = vand.u32 2147483647, %v610_v36  ;;  %vm616_vm15 = vweird.f32 %v610_v36 }
 0x195   :  { %1833 = vrcp.f32 %v629_v51  ;;  %v588_v41 = vpop.f32.mrf.mxu2  ;;  %v601_v39 = vpop.f32.mrf.mxu3  ;;  %v641_v15 = vand.u32 2147483648, %v629_v51  ;;  %v639_v3 = vand.u32 2147483647, %v629_v51  ;;  %vm635_vm1 = vweird.f32 %v629_v51 }
 0x196   :  { %v623_v26 = vor.u32 1.1754944e-38, %v622_v42  ;;  %vm621_vm4 = vcmp.eq.f32.partialorder %v620_v19, 8.507059e+37 }
 0x197   :  { %v642_v41 = vor.u32 1.1754944e-38, %v641_v15  ;;  %vm640_vm5 = vcmp.eq.f32.partialorder %v639_v3, 8.507059e+37 }
 0x198   :  { %v1830_v20 = vpop.eup %1829 }
 0x199   :  { %v649_v34 = vadd.f32 1.0, %v1830_v20 }
 0x19a   :  { %v1832_v25 = vpop.eup %1831 }
 0x19b   :  { %v1834_v49 = vpop.eup %1833  ;;  %v612_v16 = vmul.f32 %v1832_v25, %v610_v36  ;;  %1835 = vrcp.f32 %v649_v34  ;;  %vm617_vm13 = vweird.f32 %v1832_v25  ;;  %v661_v42 = vand.u32 2147483648, %v649_v34 }
 0x19c   :  { %v631_v14 = vmul.f32 %v1834_v49, %v629_v51  ;;  %1837 = vtanh.f32 %v605_v24  ;;  %vm636_vm14 = vweird.f32 %v1834_v49  ;;  %vm618_vm2 = vmor %vm616_vm15, %vm617_vm13  ;;  %vm655_vm7 = vweird.f32 %v649_v34 }
 0x19d   :  { %v613_v33 = vsub.f32 1.0, %v612_v16  ;;  %vm637_vm3 = vmor %vm635_vm1, %vm636_vm14  ;;  %v662_v19 = vor.u32 1.1754944e-38, %v661_v42 }
 0x19e   :  { %v632_v17 = vsub.f32 1.0, %v631_v14 }
 0x19f   :  { %v614_v50 = vmul.f32 %v1832_v25, %v613_v33 }
 0x1a0   :  { %v633_v10 = vmul.f32 %v1834_v49, %v632_v17 }
 0x1a1   :  { %v1836_v31 = vpop.eup %1835  ;;  %v615_v23 = vadd.f32 %v1832_v25, %v614_v50 }
 0x1a2   :  { %v634_v30 = vadd.f32 %v1834_v49, %v633_v10  ;;  %v651_v48 = vmul.f32 %v1836_v31, %v649_v34  ;;  %v1838_v20 = vpop.eup %1837  ;;  %vm656_vm6 = vweird.f32 %v1836_v31 }
 0x1a3   :  { %v619_v39 = vsel %vm618_vm2, %v1832_v25, %v615_v23  ;;  %v659_v25 = vand.u32 2147483647, %v649_v34  ;;  %vm657_vm8 = vmor %vm655_vm7, %vm656_vm6  ;;  %v138_v34 = vadd.f32 %v2526_v5, %v2476_v0 }
 0x1a4   :  { %v624_v57 = vsel %vm621_vm4, %v623_v26, %v619_v39  ;;  %v638_v24 = vsel %vm637_vm3, %v1834_v49, %v634_v30  ;;  %v652_v16 = vsub.f32 1.0, %v651_v48 }
 0x1a5   :  { %v643_v14 = vsel %vm640_vm5, %v642_v41, %v638_v24  ;;  %v666_v33 = vmul.f32 %v1838_v20, %v624_v57  ;;  %vm660_vm9 = vcmp.eq.f32.partialorder %v659_v25, 8.507059e+37 }
 0x1a6   :  { %v665_v17 = vmul.f32 %v643_v14, %v2487_v60  ;;  %v653_v50 = vmul.f32 %v1836_v31, %v652_v16 }
 0x1a8   :  { %v2536_v36 = vadd.f32 %v666_v33, %v665_v17  ;;  %v654_v51 = vadd.f32 %v1836_v31, %v653_v50 }
 0x1aa   :  { %1839 = vtanh.f32 %v2536_v36  ;;  %v658_v15 = vsel %vm657_vm8, %v1836_v31, %v654_v51 }
 0x1ab   :  { %v663_v10 = vsel %vm660_vm9, %v662_v19, %v658_v15  ;;  %v2845_v19 = vld [vmem:[#allocation6_spill] sm:$0xff] }
 0x1b0   :  { %v1840_v49 = vpop.eup %1839 }
 0x1b1   :  { %v2539_v3 = vmul.f32 %v1840_v49, %v663_v10 }
 0x1b3   :  { %v670_v60 = vpack.c.bf16 %v2539_v3, %v2539_v3 }
 0x1b5   :  { %679 = vmatmul.bf16.vlgmr.msra.gmra.mxu0 %v670_v60  ;;  %692 = vmatmul.bf16.vlgmr.msra.gmra.mxu1 %v670_v60 }
 0x1b6   :  { %705 = vmatmul.bf16.vlgmr.msra.gmra.mxu2 %v670_v60  ;;  %718 = vmatmul.bf16.vlgmr.msra.gmra.mxu3 %v670_v60 }
 0x1b7   :  { %911 = vmatpush.bf16.msra.mxu0 %v2042_v27  ;;  %924 = vmatpush.bf16.msra.mxu1 %v2060_v35 }
 0x1b8   :  { %937 = vmatpush.bf16.msra.mxu2 %v2245_v29  ;;  %950 = vmatpush.bf16.msra.mxu3 %v2071_v38 }
 0x1bb   :  { %912 = vmatpush.bf16.msra.mxu0 %v2069_v37  ;;  %925 = vmatpush.bf16.msra.mxu1 %v2095_v45 }
 0x1bc   :  { %938 = vmatpush.bf16.msra.mxu2 %v2256_v32  ;;  %951 = vmatpush.bf16.msra.mxu3 %v2101_v47 }
 0x1bf   :  { %913 = vmatpush.bf16.msra.mxu0 %v2099_v46  ;;  %926 = vmatpush.bf16.msra.mxu1 %v2125_v54 }
 0x1c0   :  { %939 = vmatpush.bf16.msra.mxu2 %v2284_v43  ;;  %952 = vmatpush.bf16.msra.mxu3 %v2131_v56 }
 0x1c3   :  { %914 = vmatpush.bf16.msra.mxu0 %v2129_v55  ;;  %927 = vmatpush.bf16.msra.mxu1 %v2153_v63 }
 0x1c4   :  { %940 = vmatpush.bf16.msra.mxu2 %v2314_v59  ;;  %953 = vmatpush.bf16.msra.mxu3 %v2160_v1 }
 0x1c7   :  { %915 = vmatpush.bf16.msra.mxu0 %v2162_v2  ;;  %928 = vmatpush.bf16.msra.mxu1 %v2190_v9 }
 0x1c8   :  { %941 = vmatpush.bf16.msra.mxu2 %v2328_v62  ;;  %954 = vmatpush.bf16.msra.mxu3 %v2202_v13 }
 0x1cb   :  { %916 = vmatpush.bf16.msra.mxu0 %v2185_v7  ;;  %929 = vmatpush.bf16.msra.mxu1 %v2211_v18 }
 0x1cc   :  { %942 = vmatpush.bf16.msra.mxu2 %v2340_v4  ;;  %955 = vmatpush.bf16.msra.mxu3 %v2224_v22 }
 0x1cf   :  { %917 = vmatpush.bf16.msra.mxu0 %v2222_v21  ;;  %930 = vmatpush.bf16.msra.mxu1 %v2275_v40 }
 0x1d0   :  { %943 = vmatpush.bf16.msra.mxu2 %v2358_v8  ;;  %956 = vmatpush.bf16.msra.mxu3 %v2286_v44 }
 0x1d3   :  { %918 = vmatpush.bf16.msra.mxu0 %v2242_v28  ;;  %931 = vmatpush.bf16.msra.mxu1 %v2302_v52 }
 0x1d4   :  { %944 = vmatpush.bf16.msra.mxu2 %v2370_v11  ;;  %957 = vmatpush.bf16.msra.mxu3 %v2311_v58 }
 0x232   :  { %v680_v31 = vpop.f32.mrf.mxu0  ;;  %v693_v23 = vpop.f32.mrf.mxu1 }
 0x233   :  { %v723_v26 = vadd.f32 %v680_v31, %v138_v34  ;;  %v724_v30 = vadd.f32 %v693_v23, %v2446_v53 }
 0x235   :  { %v1701_v48 = vmul.f32 -1.442695, %v723_v26  ;;  %v1702_v41 = vmul.f32 -1.442695, %v724_v30 }
 0x237   :  { %1841 = vpow2.f32 %v1701_v48 }
 0x238   :  { %1843 = vpow2.f32 %v1702_v41 }
 0x239   :  { %v706_v39 = vpop.f32.mrf.mxu2  ;;  %v719_v20 = vpop.f32.mrf.mxu3 }
 0x23a   :  { %v726_v57 = vadd.f32 %v719_v20, %v2448_v61  ;;  %v682_v24 = vpop.f32.mrf.mxu0  ;;  %v695_v16 = vpop.f32.mrf.mxu1  ;;  %v725_v49 = vadd.f32 %v706_v39, %v2845_v19 }
 0x23c   :  { %v1703_v14 = vmul.f32 -1.442695, %v726_v57 }
 0x23d   :  { %v1842_v33 = vpop.eup %1841 }
 0x23e   :  { %v1844_v17 = vpop.eup %1843  ;;  %v730_v50 = vadd.f32 1.0, %v1842_v33  ;;  %1845 = vpow2.f32 %v1703_v14 }
 0x23f   :  { %v749_v5 = vadd.f32 1.0, %v1844_v17 }
 0x240   :  { %1847 = vrcp.f32 %v730_v50  ;;  %v742_v23 = vand.u32 2147483648, %v730_v50  ;;  %v740_v48 = vand.u32 2147483647, %v730_v50  ;;  %vm736_vm12 = vweird.f32 %v730_v50 }
 0x241   :  { %1849 = vrcp.f32 %v749_v5  ;;  %v708_v51 = vpop.f32.mrf.mxu2  ;;  %v721_v53 = vpop.f32.mrf.mxu3  ;;  %v761_v26 = vand.u32 2147483648, %v749_v5  ;;  %v759_v20 = vand.u32 2147483647, %v749_v5  ;;  %vm755_vm13 = vweird.f32 %v749_v5 }
 0x242   :  { %v743_v39 = vor.u32 1.1754944e-38, %v742_v23  ;;  %vm741_vm1 = vcmp.eq.f32.partialorder %v740_v48, 8.507059e+37 }
 0x243   :  { %v762_v33 = vor.u32 1.1754944e-38, %v761_v26  ;;  %vm760_vm2 = vcmp.eq.f32.partialorder %v759_v20, 8.507059e+37 }
 0x244   :  { %v1846_v42 = vpop.eup %1845 }
 0x245   :  { %v769_v25 = vadd.f32 1.0, %v1846_v42 }
 0x246   :  { %v1848_v15 = vpop.eup %1847 }
 0x247   :  { %v1850_v10 = vpop.eup %1849  ;;  %v732_v60 = vmul.f32 %v1848_v15, %v730_v50  ;;  %1851 = vrcp.f32 %v769_v25  ;;  %vm737_vm10 = vweird.f32 %v1848_v15  ;;  %vm775_vm4 = vweird.f32 %v769_v25 }
 0x248   :  { %v751_v61 = vmul.f32 %v1850_v10, %v749_v5  ;;  %1853 = vtanh.f32 %v725_v49  ;;  %vm756_vm11 = vweird.f32 %v1850_v10  ;;  %vm738_vm14 = vmor %vm736_vm12, %vm737_vm10 }
 0x249   :  { %v733_v34 = vsub.f32 1.0, %v732_v60  ;;  %vm757_vm15 = vmor %vm755_vm13, %vm756_vm11 }
 0x24a   :  { %v752_v31 = vsub.f32 1.0, %v751_v61 }
 0x24b   :  { %v734_v30 = vmul.f32 %v1848_v15, %v733_v34 }
 0x24c   :  { %v753_v41 = vmul.f32 %v1850_v10, %v752_v31  ;;  %v781_v31 = vand.u32 2147483648, %v769_v25 }
 0x24d   :  { %v1852_v57 = vpop.eup %1851  ;;  %v735_v24 = vadd.f32 %v1848_v15, %v734_v30 }
 0x24e   :  { %v754_v16 = vadd.f32 %v1850_v10, %v753_v41  ;;  %v771_v14 = vmul.f32 %v1852_v57, %v769_v25  ;;  %v1854_v51 = vpop.eup %1853  ;;  %vm776_vm3 = vweird.f32 %v1852_v57  ;;  %v782_v26 = vor.u32 1.1754944e-38, %v781_v31 }
 0x24f   :  { %v739_v17 = vsel %vm738_vm14, %v1848_v15, %v735_v24  ;;  %v779_v15 = vand.u32 2147483647, %v769_v25  ;;  %vm777_vm5 = vmor %vm775_vm4, %vm776_vm3  ;;  %v140_v25 = vadd.f32 %v2528_v6, %v2476_v0  ;;  %v2846_v24 = vld [vmem:[#allocation9_spill] sm:$0xff] }
 0x250   :  { %v744_v53 = vsel %vm741_vm1, %v743_v39, %v739_v17  ;;  %v758_v42 = vsel %vm757_vm15, %v1850_v10, %v754_v16  ;;  %v772_v19 = vsub.f32 1.0, %v771_v14 }
 0x251   :  { %v763_v49 = vsel %vm760_vm2, %v762_v33, %v758_v42  ;;  %v786_v60 = vmul.f32 %v1854_v51, %v744_v53  ;;  %vm780_vm6 = vcmp.eq.f32.partialorder %v779_v15, 8.507059e+37  ;;  %v2847_v51 = vld [vmem:[#allocation10_spill] sm:$0xff] }
 0x252   :  { %v785_v61 = vmul.f32 %v763_v49, %v2536_v36  ;;  %v773_v34 = vmul.f32 %v1852_v57, %v772_v19 }
 0x254   :  { %v2581_v50 = vadd.f32 %v786_v60, %v785_v61  ;;  %v774_v5 = vadd.f32 %v1852_v57, %v773_v34 }
 0x256   :  { %1855 = vtanh.f32 %v2581_v50  ;;  %v778_v23 = vsel %vm777_vm5, %v1852_v57, %v774_v5 }
 0x257   :  { %v783_v30 = vsel %vm780_vm6, %v782_v26, %v778_v23 }
 0x25c   :  { %v1856_v10 = vpop.eup %1855 }
 0x25d   :  { %v2584_v48 = vmul.f32 %v1856_v10, %v783_v30  ;;  %v2848_v10 = vld [vmem:[#allocation7_spill] sm:$0xff] }
 0x25f   :  { %v790_v36 = vpack.c.bf16 %v2584_v48, %v2584_v48 }
 0x261   :  { %799 = vmatmul.bf16.vlgmr.msrb.gmra.mxu0 %v790_v36  ;;  %812 = vmatmul.bf16.vlgmr.msrb.gmra.mxu1 %v790_v36 }
 0x262   :  { %825 = vmatmul.bf16.vlgmr.msrb.gmra.mxu2 %v790_v36  ;;  %838 = vmatmul.bf16.vlgmr.msrb.gmra.mxu3 %v790_v36 }
 0x263   :  { %1031 = vmatpush.bf16.msrb.mxu0 %v2042_v27  ;;  %1044 = vmatpush.bf16.msrb.mxu1 %v2060_v35 }
 0x264   :  { %1057 = vmatpush.bf16.msrb.mxu2 %v2245_v29  ;;  %1070 = vmatpush.bf16.msrb.mxu3 %v2071_v38 }
 0x267   :  { %1032 = vmatpush.bf16.msrb.mxu0 %v2069_v37  ;;  %1045 = vmatpush.bf16.msrb.mxu1 %v2095_v45 }
 0x268   :  { %1058 = vmatpush.bf16.msrb.mxu2 %v2256_v32  ;;  %1071 = vmatpush.bf16.msrb.mxu3 %v2101_v47 }
 0x26b   :  { %1033 = vmatpush.bf16.msrb.mxu0 %v2099_v46  ;;  %1046 = vmatpush.bf16.msrb.mxu1 %v2125_v54 }
 0x26c   :  { %1059 = vmatpush.bf16.msrb.mxu2 %v2284_v43  ;;  %1072 = vmatpush.bf16.msrb.mxu3 %v2131_v56 }
 0x26f   :  { %1034 = vmatpush.bf16.msrb.mxu0 %v2129_v55  ;;  %1047 = vmatpush.bf16.msrb.mxu1 %v2153_v63 }
 0x270   :  { %1060 = vmatpush.bf16.msrb.mxu2 %v2314_v59  ;;  %1073 = vmatpush.bf16.msrb.mxu3 %v2160_v1 }
 0x273   :  { %1035 = vmatpush.bf16.msrb.mxu0 %v2162_v2  ;;  %1048 = vmatpush.bf16.msrb.mxu1 %v2190_v9 }
 0x274   :  { %1061 = vmatpush.bf16.msrb.mxu2 %v2328_v62  ;;  %1074 = vmatpush.bf16.msrb.mxu3 %v2202_v13 }
 0x277   :  { %1036 = vmatpush.bf16.msrb.mxu0 %v2185_v7  ;;  %1049 = vmatpush.bf16.msrb.mxu1 %v2211_v18 }
 0x278   :  { %1062 = vmatpush.bf16.msrb.mxu2 %v2340_v4  ;;  %1075 = vmatpush.bf16.msrb.mxu3 %v2224_v22 }
 0x27b   :  { %1037 = vmatpush.bf16.msrb.mxu0 %v2222_v21  ;;  %1050 = vmatpush.bf16.msrb.mxu1 %v2275_v40 }
 0x27c   :  { %1063 = vmatpush.bf16.msrb.mxu2 %v2358_v8  ;;  %1076 = vmatpush.bf16.msrb.mxu3 %v2286_v44 }
 0x27f   :  { %1038 = vmatpush.bf16.msrb.mxu0 %v2242_v28  ;;  %1051 = vmatpush.bf16.msrb.mxu1 %v2302_v52 }
 0x280   :  { %1064 = vmatpush.bf16.msrb.mxu2 %v2370_v11  ;;  %1077 = vmatpush.bf16.msrb.mxu3 %v2311_v58 }
 0x2de   :  { %v800_v41 = vpop.f32.mrf.mxu0  ;;  %v813_v20 = vpop.f32.mrf.mxu1 }
 0x2df   :  { %v843_v57 = vadd.f32 %v800_v41, %v140_v25  ;;  %v844_v39 = vadd.f32 %v813_v20, %v2846_v24 }
 0x2e1   :  { %v1704_v16 = vmul.f32 -1.442695, %v843_v57  ;;  %v1705_v14 = vmul.f32 -1.442695, %v844_v39 }
 0x2e3   :  { %1857 = vpow2.f32 %v1704_v16 }
 0x2e4   :  { %1859 = vpow2.f32 %v1705_v14 }
 0x2e5   :  { %v826_v33 = vpop.f32.mrf.mxu2  ;;  %v839_v17 = vpop.f32.mrf.mxu3 }
 0x2e6   :  { %v846_v53 = vadd.f32 %v839_v17, %v2847_v51  ;;  %v802_v42 = vpop.f32.mrf.mxu0  ;;  %v815_v19 = vpop.f32.mrf.mxu1  ;;  %v845_v30 = vadd.f32 %v826_v33, %v2848_v10 }
 0x2e8   :  { %v1706_v49 = vmul.f32 -1.442695, %v846_v53 }
 0x2e9   :  { %v1858_v60 = vpop.eup %1857 }
 0x2ea   :  { %v1860_v61 = vpop.eup %1859  ;;  %v850_v34 = vadd.f32 1.0, %v1858_v60  ;;  %1861 = vpow2.f32 %v1706_v49 }
 0x2eb   :  { %v869_v6 = vadd.f32 1.0, %v1860_v61 }
 0x2ec   :  { %1863 = vrcp.f32 %v850_v34  ;;  %v862_v24 = vand.u32 2147483648, %v850_v34  ;;  %v860_v14 = vand.u32 2147483647, %v850_v34  ;;  %vm856_vm9 = vweird.f32 %v850_v34 }
 0x2ed   :  { %1865 = vrcp.f32 %v869_v6  ;;  %v828_v5 = vpop.f32.mrf.mxu2  ;;  %v841_v31 = vpop.f32.mrf.mxu3  ;;  %v881_v39 = vand.u32 2147483648, %v869_v6  ;;  %v879_v51 = vand.u32 2147483647, %v869_v6  ;;  %vm875_vm10 = vweird.f32 %v869_v6 }
 0x2ee   :  { %v863_v33 = vor.u32 1.1754944e-38, %v862_v24  ;;  %vm861_vm13 = vcmp.eq.f32.partialorder %v860_v14, 8.507059e+37 }
 0x2ef   :  { %v882_v60 = vor.u32 1.1754944e-38, %v881_v39  ;;  %vm880_vm14 = vcmp.eq.f32.partialorder %v879_v51, 8.507059e+37 }
 0x2f0   :  { %v1862_v15 = vpop.eup %1861 }
 0x2f1   :  { %v889_v23 = vadd.f32 1.0, %v1862_v15 }
 0x2f2   :  { %v1864_v26 = vpop.eup %1863 }
 0x2f3   :  { %v1866_v36 = vpop.eup %1865  ;;  %v852_v25 = vmul.f32 %v1864_v26, %v850_v34  ;;  %1867 = vrcp.f32 %v889_v23  ;;  %vm857_vm7 = vweird.f32 %v1864_v26  ;;  %vm895_vm1 = vweird.f32 %v889_v23 }
 0x2f4   :  { %v871_v41 = vmul.f32 %v1866_v36, %v869_v6  ;;  %1869 = vtanh.f32 %v845_v30  ;;  %vm876_vm8 = vweird.f32 %v1866_v36  ;;  %vm858_vm11 = vmor %vm856_vm9, %vm857_vm7 }
 0x2f5   :  { %v853_v20 = vsub.f32 1.0, %v852_v25  ;;  %vm877_vm12 = vmor %vm875_vm10, %vm876_vm8 }
 0x2f6   :  { %v872_v57 = vsub.f32 1.0, %v871_v41 }
 0x2f7   :  { %v854_v16 = vmul.f32 %v1864_v26, %v853_v20 }
 0x2f8   :  { %v873_v17 = vmul.f32 %v1866_v36, %v872_v57  ;;  %v901_v57 = vand.u32 2147483648, %v889_v23 }
 0x2f9   :  { %v1868_v53 = vpop.eup %1867  ;;  %v855_v42 = vadd.f32 %v1864_v26, %v854_v16 }
 0x2fa   :  { %v874_v19 = vadd.f32 %v1866_v36, %v873_v17  ;;  %v891_v49 = vmul.f32 %v1868_v53, %v889_v23  ;;  %v1870_v5 = vpop.eup %1869  ;;  %vm896_vm15 = vweird.f32 %v1868_v53  ;;  %v902_v39 = vor.u32 1.1754944e-38, %v901_v57 }
 0x2fb   :  { %v859_v61 = vsel %vm858_vm11, %v1864_v26, %v855_v42  ;;  %v899_v26 = vand.u32 2147483647, %v889_v23  ;;  %vm897_vm2 = vmor %vm895_vm1, %vm896_vm15  ;;  %v2849_v23 = vld [vmem:[#allocation2_spill] sm:$0xff] }
 0x2fc   :  { %v864_v31 = vsel %vm861_vm13, %v863_v33, %v859_v61  ;;  %v878_v15 = vsel %vm877_vm12, %v1866_v36, %v874_v19  ;;  %v892_v10 = vsub.f32 1.0, %v891_v49  ;;  %v143_v17 = vadd.f32 %v2849_v23, %v2476_v0  ;;  %v2850_v33 = vld [vmem:[#allocation12_spill] sm:$0xff] }
 0x2fd   :  { %v883_v30 = vsel %vm880_vm14, %v882_v60, %v878_v15  ;;  %v906_v25 = vmul.f32 %v1870_v5, %v864_v31  ;;  %vm900_vm3 = vcmp.eq.f32.partialorder %v899_v26, 8.507059e+37  ;;  %v2851_v31 = vld [vmem:[#allocation13_spill] sm:$0xff] }
 0x2fe   :  { %v905_v41 = vmul.f32 %v883_v30, %v2581_v50  ;;  %v893_v20 = vmul.f32 %v1868_v53, %v892_v10 }
 0x300   :  { %v2626_v34 = vadd.f32 %v906_v25, %v905_v41  ;;  %v894_v6 = vadd.f32 %v1868_v53, %v893_v20 }
 0x302   :  { %1871 = vtanh.f32 %v2626_v34  ;;  %v898_v24 = vsel %vm897_vm2, %v1868_v53, %v894_v6 }
 0x303   :  { %v903_v16 = vsel %vm900_vm3, %v902_v39, %v898_v24 }
 0x308   :  { %v1872_v36 = vpop.eup %1871 }
 0x309   :  { %v2629_v14 = vmul.f32 %v1872_v36, %v903_v16 }
 0x30b   :  { %v910_v50 = vpack.c.bf16 %v2629_v14, %v2629_v14 }
 0x30d   :  { %919 = vmatmul.bf16.vlgmr.msra.gmra.mxu0 %v910_v50  ;;  %932 = vmatmul.bf16.vlgmr.msra.gmra.mxu1 %v910_v50 }
 0x30e   :  { %945 = vmatmul.bf16.vlgmr.msra.gmra.mxu2 %v910_v50  ;;  %958 = vmatmul.bf16.vlgmr.msra.gmra.mxu3 %v910_v50  ;;  %v2852_v50 = vld [vmem:[#allocation8_spill] sm:$0xff] }
 0x30f   :  { %1151 = vmatpush.bf16.msra.mxu0 %v2042_v27  ;;  %1164 = vmatpush.bf16.msra.mxu1 %v2060_v35 }
 0x310   :  { %1177 = vmatpush.bf16.msra.mxu2 %v2245_v29  ;;  %1190 = vmatpush.bf16.msra.mxu3 %v2071_v38 }
 0x313   :  { %1152 = vmatpush.bf16.msra.mxu0 %v2069_v37  ;;  %1165 = vmatpush.bf16.msra.mxu1 %v2095_v45 }
 0x314   :  { %1178 = vmatpush.bf16.msra.mxu2 %v2256_v32  ;;  %1191 = vmatpush.bf16.msra.mxu3 %v2101_v47 }
 0x317   :  { %1153 = vmatpush.bf16.msra.mxu0 %v2099_v46  ;;  %1166 = vmatpush.bf16.msra.mxu1 %v2125_v54 }
 0x318   :  { %1179 = vmatpush.bf16.msra.mxu2 %v2284_v43  ;;  %1192 = vmatpush.bf16.msra.mxu3 %v2131_v56 }
 0x31b   :  { %1154 = vmatpush.bf16.msra.mxu0 %v2129_v55  ;;  %1167 = vmatpush.bf16.msra.mxu1 %v2153_v63 }
 0x31c   :  { %1180 = vmatpush.bf16.msra.mxu2 %v2314_v59  ;;  %1193 = vmatpush.bf16.msra.mxu3 %v2160_v1 }
 0x31f   :  { %1155 = vmatpush.bf16.msra.mxu0 %v2162_v2  ;;  %1168 = vmatpush.bf16.msra.mxu1 %v2190_v9 }
 0x320   :  { %1181 = vmatpush.bf16.msra.mxu2 %v2328_v62  ;;  %1194 = vmatpush.bf16.msra.mxu3 %v2202_v13 }
 0x323   :  { %1156 = vmatpush.bf16.msra.mxu0 %v2185_v7  ;;  %1169 = vmatpush.bf16.msra.mxu1 %v2211_v18 }
 0x324   :  { %1182 = vmatpush.bf16.msra.mxu2 %v2340_v4  ;;  %1195 = vmatpush.bf16.msra.mxu3 %v2224_v22 }
 0x327   :  { %1157 = vmatpush.bf16.msra.mxu0 %v2222_v21  ;;  %1170 = vmatpush.bf16.msra.mxu1 %v2275_v40 }
 0x328   :  { %1183 = vmatpush.bf16.msra.mxu2 %v2358_v8  ;;  %1196 = vmatpush.bf16.msra.mxu3 %v2286_v44 }
 0x32b   :  { %1158 = vmatpush.bf16.msra.mxu0 %v2242_v28  ;;  %1171 = vmatpush.bf16.msra.mxu1 %v2302_v52 }
 0x32c   :  { %1184 = vmatpush.bf16.msra.mxu2 %v2370_v11  ;;  %1197 = vmatpush.bf16.msra.mxu3 %v2311_v58 }
 0x38a   :  { %v920_v51 = vpop.f32.mrf.mxu0  ;;  %v933_v53 = vpop.f32.mrf.mxu1 }
 0x38b   :  { %v963_v42 = vadd.f32 %v920_v51, %v143_v17  ;;  %v964_v19 = vadd.f32 %v933_v53, %v2850_v33 }
 0x38d   :  { %v1707_v49 = vmul.f32 -1.442695, %v963_v42  ;;  %v1708_v60 = vmul.f32 -1.442695, %v964_v19 }
 0x38f   :  { %1873 = vpow2.f32 %v1707_v49 }
 0x390   :  { %1875 = vpow2.f32 %v1708_v60 }
 0x391   :  { %v946_v61 = vpop.f32.mrf.mxu2  ;;  %v959_v5 = vpop.f32.mrf.mxu3 }
 0x392   :  { %v966_v15 = vadd.f32 %v959_v5, %v2851_v31  ;;  %v922_v10 = vpop.f32.mrf.mxu0  ;;  %v935_v30 = vpop.f32.mrf.mxu1  ;;  %v965_v23 = vadd.f32 %v946_v61, %v2852_v50 }
 0x394   :  { %v1709_v25 = vmul.f32 -1.442695, %v966_v15 }
 0x395   :  { %v1874_v41 = vpop.eup %1873 }
 0x396   :  { %v1876_v20 = vpop.eup %1875  ;;  %v970_v6 = vadd.f32 1.0, %v1874_v41  ;;  %1877 = vpow2.f32 %v1709_v25 }
 0x397   :  { %v989_v57 = vadd.f32 1.0, %v1876_v20 }
 0x398   :  { %1879 = vrcp.f32 %v970_v6  ;;  %v982_v19 = vand.u32 2147483648, %v970_v6  ;;  %v980_v5 = vand.u32 2147483647, %v970_v6  ;;  %vm976_vm6 = vweird.f32 %v970_v6 }
 0x399   :  { %1881 = vrcp.f32 %v989_v57  ;;  %v948_v26 = vpop.f32.mrf.mxu2  ;;  %v961_v24 = vpop.f32.mrf.mxu3  ;;  %v1001_v49 = vand.u32 2147483648, %v989_v57  ;;  %v999_v15 = vand.u32 2147483647, %v989_v57  ;;  %vm995_vm7 = vweird.f32 %v989_v57 }
 0x39a   :  { %v983_v61 = vor.u32 1.1754944e-38, %v982_v19  ;;  %vm981_vm10 = vcmp.eq.f32.partialorder %v980_v5, 8.507059e+37 }
 0x39b   :  { %v1002_v20 = vor.u32 1.1754944e-38, %v1001_v49  ;;  %vm1000_vm11 = vcmp.eq.f32.partialorder %v999_v15, 8.507059e+37 }
 0x39c   :  { %v1878_v39 = vpop.eup %1877 }
 0x39d   :  { %v1009_v36 = vadd.f32 1.0, %v1878_v39 }
 0x39e   :  { %v1880_v16 = vpop.eup %1879 }
 0x39f   :  { %v1882_v17 = vpop.eup %1881  ;;  %v972_v51 = vmul.f32 %v1880_v16, %v970_v6  ;;  %1883 = vrcp.f32 %v1009_v36  ;;  %vm977_vm4 = vweird.f32 %v1880_v16  ;;  %v1021_v19 = vand.u32 2147483648, %v1009_v36 }
 0x3a0   :  { %v991_v53 = vmul.f32 %v1882_v17, %v989_v57  ;;  %1885 = vtanh.f32 %v965_v23  ;;  %vm996_vm5 = vweird.f32 %v1882_v17  ;;  %vm978_vm8 = vmor %vm976_vm6, %vm977_vm4  ;;  %vm1015_vm13 = vweird.f32 %v1009_v36 }
 0x3a1   :  { %v973_v42 = vsub.f32 1.0, %v972_v51  ;;  %vm997_vm9 = vmor %vm995_vm7, %vm996_vm5 }
 0x3a2   :  { %v992_v33 = vsub.f32 1.0, %v991_v53 }
 0x3a3   :  { %v974_v60 = vmul.f32 %v1880_v16, %v973_v42 }
 0x3a4   :  { %v993_v31 = vmul.f32 %v1882_v17, %v992_v33 }
 0x3a5   :  { %v1884_v10 = vpop.eup %1883  ;;  %v975_v30 = vadd.f32 %v1880_v16, %v974_v60  ;;  %v1022_v60 = vor.u32 1.1754944e-38, %v1021_v19 }
 0x3a6   :  { %v994_v25 = vadd.f32 %v1882_v17, %v993_v31  ;;  %v1011_v41 = vmul.f32 %v1884_v10, %v1009_v36  ;;  %v1886_v24 = vpop.eup %1885  ;;  %vm1016_vm12 = vweird.f32 %v1884_v10 }
 0x3a7   :  { %v979_v26 = vsel %vm978_vm8, %v1880_v16, %v975_v30  ;;  %v1019_v16 = vand.u32 2147483647, %v1009_v36  ;;  %vm1017_vm14 = vmor %vm1015_vm13, %vm1016_vm12 }
 0x3a8   :  { %v984_v39 = vsel %vm981_vm10, %v983_v61, %v979_v26  ;;  %v998_v50 = vsel %vm997_vm9, %v1882_v17, %v994_v25  ;;  %v1012_v23 = vsub.f32 1.0, %v1011_v41 }
 0x3a9   :  { %v1003_v51 = vsel %vm1000_vm11, %v1002_v20, %v998_v50  ;;  %v1026_v53 = vmul.f32 %v1886_v24, %v984_v39  ;;  %vm1020_vm15 = vcmp.eq.f32.partialorder %v1019_v16, 8.507059e+37 }
 0x3aa   :  { %v1025_v42 = vmul.f32 %v1003_v51, %v2626_v34  ;;  %v1013_v33 = vmul.f32 %v1884_v10, %v1012_v23 }
 0x3ac   :  { %v2671_v6 = vadd.f32 %v1026_v53, %v1025_v42  ;;  %v1014_v57 = vadd.f32 %v1884_v10, %v1013_v33 }
 0x3ae   :  { %1887 = vtanh.f32 %v2671_v6  ;;  %v1018_v49 = vsel %vm1017_vm14, %v1884_v10, %v1014_v57 }
 0x3af   :  { %v1023_v5 = vsel %vm1020_vm15, %v1022_v60, %v1018_v49 }
 0x3b4   :  { %v1888_v17 = vpop.eup %1887 }
 0x3b5   :  { %v2674_v31 = vmul.f32 %v1888_v17, %v1023_v5 }
 0x3b7   :  { %v1030_v34 = vpack.c.bf16 %v2674_v31, %v2674_v31 }
 0x3b9   :  { %1039 = vmatmul.bf16.vlgmr.msrb.gmra.mxu0 %v1030_v34  ;;  %1052 = vmatmul.bf16.vlgmr.msrb.gmra.mxu1 %v1030_v34 }
 0x3ba   :  { %1065 = vmatmul.bf16.vlgmr.msrb.gmra.mxu2 %v1030_v34  ;;  %1078 = vmatmul.bf16.vlgmr.msrb.gmra.mxu3 %v1030_v34 }
 0x3bb   :  { %1271 = vmatpush.bf16.msrb.mxu0 %v2042_v27  ;;  %1284 = vmatpush.bf16.msrb.mxu1 %v2060_v35  ;;  %v2853_v27 = vld [vmem:[#allocation4_spill] sm:$0xff] }
 0x3bc   :  { %1297 = vmatpush.bf16.msrb.mxu2 %v2245_v29  ;;  %1310 = vmatpush.bf16.msrb.mxu3 %v2071_v38  ;;  %v145_v35 = vadd.f32 %v2853_v27, %v2476_v0 }
 0x3bf   :  { %1272 = vmatpush.bf16.msrb.mxu0 %v2069_v37  ;;  %1285 = vmatpush.bf16.msrb.mxu1 %v2095_v45 }
 0x3c0   :  { %1298 = vmatpush.bf16.msrb.mxu2 %v2256_v32  ;;  %1311 = vmatpush.bf16.msrb.mxu3 %v2101_v47 }
 0x3c3   :  { %1273 = vmatpush.bf16.msrb.mxu0 %v2099_v46  ;;  %1286 = vmatpush.bf16.msrb.mxu1 %v2125_v54  ;;  %v2854_v46 = vld [vmem:[#allocation15_spill] sm:$0xff] }
 0x3c4   :  { %1299 = vmatpush.bf16.msrb.mxu2 %v2284_v43  ;;  %1312 = vmatpush.bf16.msrb.mxu3 %v2131_v56 }
 0x3c7   :  { %1274 = vmatpush.bf16.msrb.mxu0 %v2129_v55  ;;  %1287 = vmatpush.bf16.msrb.mxu1 %v2153_v63 }
 0x3c8   :  { %1300 = vmatpush.bf16.msrb.mxu2 %v2314_v59  ;;  %1313 = vmatpush.bf16.msrb.mxu3 %v2160_v1  ;;  %v2855_v1 = vld [vmem:[#allocation16_spill] sm:$0xff] }
 0x3cb   :  { %1275 = vmatpush.bf16.msrb.mxu0 %v2162_v2  ;;  %1288 = vmatpush.bf16.msrb.mxu1 %v2190_v9 }
 0x3cc   :  { %1301 = vmatpush.bf16.msrb.mxu2 %v2328_v62  ;;  %1314 = vmatpush.bf16.msrb.mxu3 %v2202_v13 }
 0x3cf   :  { %1276 = vmatpush.bf16.msrb.mxu0 %v2185_v7  ;;  %1289 = vmatpush.bf16.msrb.mxu1 %v2211_v18 }
 0x3d0   :  { %1302 = vmatpush.bf16.msrb.mxu2 %v2340_v4  ;;  %1315 = vmatpush.bf16.msrb.mxu3 %v2224_v22 }
 0x3d3   :  { %1277 = vmatpush.bf16.msrb.mxu0 %v2222_v21  ;;  %1290 = vmatpush.bf16.msrb.mxu1 %v2275_v40 }
 0x3d4   :  { %1303 = vmatpush.bf16.msrb.mxu2 %v2358_v8  ;;  %1316 = vmatpush.bf16.msrb.mxu3 %v2286_v44 }
 0x3d7   :  { %1278 = vmatpush.bf16.msrb.mxu0 %v2242_v28  ;;  %1291 = vmatpush.bf16.msrb.mxu1 %v2302_v52  ;;  %v2856_v52 = vld [vmem:[#allocation11_spill] sm:$0xff] }
 0x3d8   :  { %1304 = vmatpush.bf16.msrb.mxu2 %v2370_v11  ;;  %1317 = vmatpush.bf16.msrb.mxu3 %v2311_v58 }
 0x436   :  { %v1040_v37 = vpop.f32.mrf.mxu0  ;;  %v1053_v38 = vpop.f32.mrf.mxu1 }
 0x437   :  { %v1083_v45 = vadd.f32 %v1040_v37, %v145_v35  ;;  %v1084_v47 = vadd.f32 %v1053_v38, %v2854_v46  ;;  %v1802_v46 = vld [vmem:[%s2822_s4 + $0x38] sm:$0xff] }
 0x439   :  { %v1710_v54 = vmul.f32 -1.442695, %v1083_v45  ;;  %v1711_v55 = vmul.f32 -1.442695, %v1084_v47  ;;  %v2857_v47 = vld [vmem:[#allocation3_spill] sm:$0xff] }
 0x43b   :  { %1889 = vpow2.f32 %v1710_v54  ;;  %v148_v54 = vadd.f32 %v2857_v47, %v2476_v0 }
 0x43c   :  { %1891 = vpow2.f32 %v1711_v55 }
 0x43d   :  { %v1066_v56 = vpop.f32.mrf.mxu2  ;;  %v1079_v63 = vpop.f32.mrf.mxu3 }
 0x43e   :  { %v1086_v2 = vadd.f32 %v1079_v63, %v2855_v1  ;;  %v1042_v7 = vpop.f32.mrf.mxu0  ;;  %v1055_v9 = vpop.f32.mrf.mxu1  ;;  %v1085_v58 = vadd.f32 %v1066_v56, %v2856_v52  ;;  %v2858_v1 = vld [vmem:[#allocation18_spill] sm:$0xff] }
 0x43f   :  { %v1801_v7 = vld [vmem:[%s2822_s4 + $0x30] sm:$0xff] }
 0x440   :  { %v1712_v13 = vmul.f32 -1.442695, %v1086_v2 }
 0x441   :  { %v1890_v18 = vpop.eup %1889 }
 0x442   :  { %v1892_v21 = vpop.eup %1891  ;;  %v1090_v22 = vadd.f32 1.0, %v1890_v18  ;;  %1893 = vpow2.f32 %v1712_v13  ;;  %v1800_v18 = vld [vmem:[%s2822_s4 + $0x28] sm:$0xff] }
 0x443   :  { %v1109_v28 = vadd.f32 1.0, %v1892_v21 }
 0x444   :  { %1895 = vrcp.f32 %v1090_v22  ;;  %v1102_v36 = vand.u32 2147483648, %v1090_v22  ;;  %v1100_v30 = vand.u32 2147483647, %v1090_v22  ;;  %vm1096_vm3 = vweird.f32 %v1090_v22 }
 0x445   :  { %1897 = vrcp.f32 %v1109_v28  ;;  %v1068_v29 = vpop.f32.mrf.mxu2  ;;  %v1081_v32 = vpop.f32.mrf.mxu3  ;;  %v1121_v15 = vand.u32 2147483648, %v1109_v28  ;;  %v1119_v25 = vand.u32 2147483647, %v1109_v28  ;;  %vm1115_vm4 = vweird.f32 %v1109_v28 }
 0x446   :  { %v1103_v26 = vor.u32 1.1754944e-38, %v1102_v36  ;;  %vm1101_vm7 = vcmp.eq.f32.partialorder %v1100_v30, 8.507059e+37  ;;  %v1797_v36 = vld [vmem:[%s2822_s4 + $0x10] sm:$0xff] }
 0x447   :  { %v1122_v50 = vor.u32 1.1754944e-38, %v1121_v15  ;;  %vm1120_vm8 = vcmp.eq.f32.partialorder %v1119_v25, 8.507059e+37 }
 0x448   :  { %v1894_v40 = vpop.eup %1893 }
 0x449   :  { %v1129_v43 = vadd.f32 1.0, %v1894_v40 }
 0x44a   :  { %v1896_v44 = vpop.eup %1895 }
 0x44b   :  { %v1898_v59 = vpop.eup %1897  ;;  %v1092_v62 = vmul.f32 %v1896_v44, %v1090_v22  ;;  %1899 = vrcp.f32 %v1129_v43  ;;  %vm1097_vm1 = vweird.f32 %v1896_v44  ;;  %v1141_v5 = vand.u32 2147483648, %v1129_v43 }
 0x44c   :  { %v1111_v4 = vmul.f32 %v1898_v59, %v1109_v28  ;;  %1901 = vtanh.f32 %v1085_v58  ;;  %vm1116_vm2 = vweird.f32 %v1898_v59  ;;  %vm1098_vm5 = vmor %vm1096_vm3, %vm1097_vm1  ;;  %vm1135_vm10 = vweird.f32 %v1129_v43  ;;  %v2859_v28 = vld [vmem:[#allocation19_spill] sm:$0xff] }
 0x44d   :  { %v1093_v8 = vsub.f32 1.0, %v1092_v62  ;;  %vm1117_vm6 = vmor %vm1115_vm4, %vm1116_vm2  ;;  %v1139_v34 = vand.u32 2147483647, %v1129_v43  ;;  %v1142_v35 = vor.u32 1.1754944e-38, %v1141_v5 }
 0x44e   :  { %v1112_v11 = vsub.f32 1.0, %v1111_v4 }
 0x44f   :  { %v1094_v10 = vmul.f32 %v1896_v44, %v1093_v8  ;;  %vm1140_vm12 = vcmp.eq.f32.partialorder %v1139_v34, 8.507059e+37 }
 0x450   :  { %v1113_v61 = vmul.f32 %v1898_v59, %v1112_v11  ;;  %v1798_v11 = vld [vmem:[%s2822_s4 + $0x18] sm:$0xff] }
 0x451   :  { %v1900_v41 = vpop.eup %1899  ;;  %v1095_v20 = vadd.f32 %v1896_v44, %v1094_v10 }
 0x452   :  { %v1114_v24 = vadd.f32 %v1898_v59, %v1113_v61  ;;  %v1131_v39 = vmul.f32 %v1900_v41, %v1129_v43  ;;  %v1902_v51 = vpop.eup %1901  ;;  %vm1136_vm9 = vweird.f32 %v1900_v41  ;;  %v1799_v43 = vld [vmem:[%s2822_s4 + $0x20] sm:$0xff] }
 0x453   :  { %v1099_v23 = vsel %vm1098_vm5, %v1896_v44, %v1095_v20  ;;  %vm1137_vm11 = vmor %vm1135_vm10, %vm1136_vm9  ;;  %v2860_v61 = vld [vmem:[#allocation14_spill] sm:$0xff] }
 0x454   :  { %v1104_v53 = vsel %vm1101_vm7, %v1103_v26, %v1099_v23  ;;  %v1118_v42 = vsel %vm1117_vm6, %v1898_v59, %v1114_v24  ;;  %v1132_v33 = vsub.f32 1.0, %v1131_v39  ;;  %v1796_v26 = vld [vmem:[%s2822_s4 + $0x8] sm:$0xff] }
 0x455   :  { %v1123_v57 = vsel %vm1120_vm8, %v1122_v50, %v1118_v42  ;;  %v1146_v19 = vmul.f32 %v1902_v51, %v1104_v53 }
 0x456   :  { %v1145_v16 = vmul.f32 %v1123_v57, %v2671_v6  ;;  %v1133_v49 = vmul.f32 %v1900_v41, %v1132_v33  ;;  %v1795_v33 = vld [vmem:[%s2822_s4] sm:$0xff] }
 0x458   :  { %v2716_v60 = vadd.f32 %v1146_v19, %v1145_v16  ;;  %v1134_v17 = vadd.f32 %v1900_v41, %v1133_v49 }
 0x45a   :  { %1903 = vtanh.f32 %v2716_v60  ;;  %v1138_v27 = vsel %vm1137_vm11, %v1900_v41, %v1134_v17 }
 0x45b   :  { %v1143_v38 = vsel %vm1140_vm12, %v1142_v35, %v1138_v27 }
 0x460   :  { %v1904_v37 = vpop.eup %1903 }
 0x461   :  { %v2719_v45 = vmul.f32 %v1904_v37, %v1143_v38 }
 0x463   :  { %v1150_v6 = vpack.c.bf16 %v2719_v45, %v2719_v45 }
 0x465   :  { %1159 = vmatmul.bf16.vlgmr.msra.gmra.mxu0 %v1150_v6  ;;  %1172 = vmatmul.bf16.vlgmr.msra.gmra.mxu1 %v1150_v6 }
 0x466   :  { %1185 = vmatmul.bf16.vlgmr.msra.gmra.mxu2 %v1150_v6  ;;  %1198 = vmatmul.bf16.vlgmr.msra.gmra.mxu3 %v1150_v6 }
 0x467   :  { %1462 = vmatpush.bf16.msra.mxu0 %v1802_v46 }
 0x46b   :  { %1463 = vmatpush.bf16.msra.mxu0 %v1801_v7 }
 0x46f   :  { %1464 = vmatpush.bf16.msra.mxu0 %v1800_v18 }
 0x473   :  { %1465 = vmatpush.bf16.msra.mxu0 %v1799_v43 }
 0x477   :  { %1466 = vmatpush.bf16.msra.mxu0 %v1798_v11 }
 0x47b   :  { %1467 = vmatpush.bf16.msra.mxu0 %v1797_v36 }
 0x47f   :  { %1468 = vmatpush.bf16.msra.mxu0 %v1796_v26 }
 0x483   :  { %1469 = vmatpush.bf16.msra.mxu0 %v1795_v33 }
 0x4e2   :  { %v1160_v55 = vpop.f32.mrf.mxu0  ;;  %v1173_v56 = vpop.f32.mrf.mxu1 }
 0x4e3   :  { %v1203_v63 = vadd.f32 %v1160_v55, %v148_v54  ;;  %v1204_v2 = vadd.f32 %v1173_v56, %v2858_v1 }
 0x4e5   :  { %v1713_v9 = vmul.f32 -1.442695, %v1203_v63  ;;  %v1714_v13 = vmul.f32 -1.442695, %v1204_v2 }
 0x4e7   :  { %1905 = vpow2.f32 %v1713_v9 }
 0x4e8   :  { %1907 = vpow2.f32 %v1714_v13 }
 0x4e9   :  { %v1186_v21 = vpop.f32.mrf.mxu2  ;;  %v1199_v22 = vpop.f32.mrf.mxu3 }
 0x4ea   :  { %v1206_v29 = vadd.f32 %v1199_v22, %v2859_v28  ;;  %v1162_v32 = vpop.f32.mrf.mxu0  ;;  %v1175_v40 = vpop.f32.mrf.mxu1  ;;  %v1205_v25 = vadd.f32 %v1186_v21, %v2860_v61  ;;  %v1390_v28 = vpack.c.bf16 %v2539_v3, %v2490_v12 }
 0x4eb   :  { %v1392_v32 = vpack.c.bf16 %v2719_v45, %v2674_v31  ;;  %v2861_v40 = vld [vmem:[#allocation5_spill] sm:$0xff] }
 0x4ec   :  { %v1715_v44 = vmul.f32 -1.442695, %v1206_v29  ;;  %v1391_v29 = vpack.c.bf16 %v2629_v14, %v2584_v48  ;;  %v150_v43 = vadd.f32 %v2861_v40, %v2476_v0  ;;  %v2863_v48 = vld [vmem:[#allocation21_spill] sm:$0xff] }
 0x4ed   :  { %v1906_v52 = vpop.eup %1905 }
 0x4ee   :  { %v1908_v58 = vpop.eup %1907  ;;  %v1210_v59 = vadd.f32 1.0, %v1906_v52  ;;  %1909 = vpow2.f32 %v1715_v44 }
 0x4ef   :  { %v1229_v62 = vadd.f32 1.0, %v1908_v58 }
 0x4f0   :  { %1911 = vrcp.f32 %v1210_v59  ;;  %v1222_v23 = vand.u32 2147483648, %v1210_v59  ;;  %v1220_v42 = vand.u32 2147483647, %v1210_v59  ;;  %vm1216_vm15 = vweird.f32 %v1210_v59 }
 0x4f1   :  { %1913 = vrcp.f32 %v1229_v62  ;;  %v1188_v4 = vpop.f32.mrf.mxu2  ;;  %v1201_v8 = vpop.f32.mrf.mxu3  ;;  %v1241_v51 = vand.u32 2147483648, %v1229_v62  ;;  %v1239_v19 = vand.u32 2147483647, %v1229_v62  ;;  %vm1235_vm1 = vweird.f32 %v1229_v62 }
 0x4f2   :  { %v1223_v17 = vor.u32 1.1754944e-38, %v1222_v23  ;;  %vm1221_vm4 = vcmp.eq.f32.partialorder %v1220_v42, 8.507059e+37 }
 0x4f3   :  { %v1242_v27 = vor.u32 1.1754944e-38, %v1241_v51  ;;  %vm1240_vm5 = vcmp.eq.f32.partialorder %v1239_v19, 8.507059e+37 }
 0x4f4   :  { %v1910_v15 = vpop.eup %1909 }
 0x4f5   :  { %v1249_v10 = vadd.f32 1.0, %v1910_v15 }
 0x4f6   :  { %v1912_v30 = vpop.eup %1911 }
 0x4f7   :  { %v1914_v41 = vpop.eup %1913  ;;  %v1212_v20 = vmul.f32 %v1912_v30, %v1210_v59  ;;  %1915 = vrcp.f32 %v1249_v10  ;;  %vm1217_vm13 = vweird.f32 %v1912_v30  ;;  %v1261_v2 = vand.u32 2147483648, %v1249_v10  ;;  %v2862_v59 = vld [vmem:[#allocation20_spill] sm:$0xff] }
 0x4f8   :  { %v1231_v24 = vmul.f32 %v1914_v41, %v1229_v62  ;;  %1917 = vtanh.f32 %v1205_v25  ;;  %vm1236_vm14 = vweird.f32 %v1914_v41  ;;  %vm1218_vm2 = vmor %vm1216_vm15, %vm1217_vm13  ;;  %vm1255_vm7 = vweird.f32 %v1249_v10 }
 0x4f9   :  { %v1213_v39 = vsub.f32 1.0, %v1212_v20  ;;  %vm1237_vm3 = vmor %vm1235_vm1, %vm1236_vm14  ;;  %v1259_v7 = vand.u32 2147483647, %v1249_v10  ;;  %v1262_v13 = vor.u32 1.1754944e-38, %v1261_v2 }
 0x4fa   :  { %v1232_v50 = vsub.f32 1.0, %v1231_v24 }
 0x4fb   :  { %v1214_v53 = vmul.f32 %v1912_v30, %v1213_v39  ;;  %vm1260_vm9 = vcmp.eq.f32.partialorder %v1259_v7, 8.507059e+37 }
 0x4fc   :  { %v1233_v57 = vmul.f32 %v1914_v41, %v1232_v50  ;;  %v2864_v50 = vld [vmem:[#allocation17_spill] sm:$0xff] }
 0x4fd   :  { %v1916_v16 = vpop.eup %1915  ;;  %v1215_v49 = vadd.f32 %v1912_v30, %v1214_v53 }
 0x4fe   :  { %v1234_v5 = vadd.f32 %v1914_v41, %v1233_v57  ;;  %v1251_v34 = vmul.f32 %v1916_v16, %v1249_v10  ;;  %v1918_v37 = vpop.eup %1917  ;;  %vm1256_vm6 = vweird.f32 %v1916_v16 }
 0x4ff   :  { %v1219_v35 = vsel %vm1218_vm2, %v1912_v30, %v1215_v49  ;;  %vm1257_vm8 = vmor %vm1255_vm7, %vm1256_vm6  ;;  %v2773_v30 = vld [vmem:[%s2823_s5] ss:$0 sm:$0xff] }
 0x500   :  { %v1224_v38 = vsel %vm1221_vm4, %v1223_v17, %v1219_v35  ;;  %v1238_v6 = vsel %vm1237_vm3, %v1914_v41, %v1234_v5  ;;  %v1252_v46 = vsub.f32 1.0, %v1251_v34 }
 0x501   :  { %v1243_v47 = vsel %vm1240_vm5, %v1242_v27, %v1238_v6  ;;  %v1266_v54 = vmul.f32 %v1918_v37, %v1224_v38 }
 0x502   :  { %v1265_v55 = vmul.f32 %v1243_v47, %v2716_v60  ;;  %v1253_v56 = vmul.f32 %v1916_v16, %v1252_v46 }
 0x504   :  { %v2753_v63 = vadd.f32 %v1266_v54, %v1265_v55  ;;  %v1254_v1 = vadd.f32 %v1916_v16, %v1253_v56 }
 0x506   :  { %1919 = vtanh.f32 %v2753_v63  ;;  %v1258_v9 = vsel %vm1257_vm8, %v1916_v16, %v1254_v1 }
 0x507   :  { %v1263_v21 = vsel %vm1260_vm9, %v1262_v13, %v1258_v9 }
 0x50c   :  { %v1920_v18 = vpop.eup %1919 }
 0x50d   :  { %v2756_v22 = vmul.f32 %v1920_v18, %v1263_v21 }
 0x50f   :  { %v1270_v60 = vpack.c.bf16 %v2756_v22, %v2756_v22 }
 0x511   :  { %1279 = vmatmul.bf16.vlgmr.msrb.gmra.mxu0 %v1270_v60  ;;  %1292 = vmatmul.bf16.vlgmr.msrb.gmra.mxu1 %v1270_v60 }
 0x512   :  { %1305 = vmatmul.bf16.vlgmr.msrb.gmra.mxu2 %v1270_v60  ;;  %1318 = vmatmul.bf16.vlgmr.msrb.gmra.mxu3 %v1270_v60 }
 0x521   :  { %1470 = vmatmul.bf16.vlgmr.msra.gmra.mxu0 %v1390_v28 }
 0x531   :  { %1475 = vmatmul.bf16.gmra.mxu0 %v1391_v29 }
 0x541   :  { %1480 = vmatmul.bf16.gmra.mxu0 %v1392_v32 }
 0x58e   :  { %v1280_v44 = vpop.f32.mrf.mxu0  ;;  %v1293_v52 = vpop.f32.mrf.mxu1 }
 0x58f   :  { %v1323_v58 = vadd.f32 %v1280_v44, %v150_v43  ;;  %v1324_v62 = vadd.f32 %v1293_v52, %v2862_v59 }
 0x591   :  { %v1716_v4 = vmul.f32 -1.442695, %v1323_v58  ;;  %v1717_v8 = vmul.f32 -1.442695, %v1324_v62 }
 0x593   :  { %1921 = vpow2.f32 %v1716_v4 }
 0x594   :  { %1923 = vpow2.f32 %v1717_v8 }
 0x595   :  { %v1306_v12 = vpop.f32.mrf.mxu2  ;;  %v1319_v3 = vpop.f32.mrf.mxu3 }
 0x596   :  { %v1326_v14 = vadd.f32 %v1319_v3, %v2863_v48  ;;  %v1282_v11 = vpop.f32.mrf.mxu0  ;;  %v1295_v36 = vpop.f32.mrf.mxu1  ;;  %v1325_v23 = vadd.f32 %v1306_v12, %v2864_v50 }
 0x598   :  { %v1718_v31 = vmul.f32 -1.442695, %v1326_v14 }
 0x599   :  { %v1922_v45 = vpop.eup %1921 }
 0x59a   :  { %v1924_v15 = vpop.eup %1923  ;;  %v1330_v10 = vadd.f32 1.0, %v1922_v45  ;;  %1925 = vpow2.f32 %v1718_v31 }
 0x59b   :  { %v1349_v0 = vadd.f32 1.0, %v1924_v15 }
 0x59c   :  { %1927 = vrcp.f32 %v1330_v10  ;;  %v1340_v19 = vand.u32 2147483647, %v1330_v10  ;;  %v1342_v16 = vand.u32 2147483648, %v1330_v10  ;;  %vm1336_vm12 = vweird.f32 %v1330_v10 }
 0x59d   :  { %1929 = vrcp.f32 %v1349_v0  ;;  %v1308_v61 = vpop.f32.mrf.mxu2  ;;  %v1321_v25 = vpop.f32.mrf.mxu3  ;;  %v1361_v17 = vand.u32 2147483648, %v1349_v0  ;;  %v1359_v35 = vand.u32 2147483647, %v1349_v0  ;;  %vm1355_vm13 = vweird.f32 %v1349_v0 }
 0x59e   :  { %v1471_v41 = vpop.f32.mrf.mxu0  ;;  %v1343_v6 = vor.u32 1.1754944e-38, %v1342_v16  ;;  %vm1341_vm1 = vcmp.eq.f32.partialorder %v1340_v19, 8.507059e+37 }
 0x59f   :  { %v1472_v20 = vadd.f32 %v2773_v30, %v1471_v41  ;;  %v1362_v54 = vor.u32 1.1754944e-38, %v1361_v17  ;;  %vm1360_vm2 = vcmp.eq.f32.partialorder %v1359_v35, 8.507059e+37 }
 0x5a0   :  { %v1926_v26 = vpop.eup %1925 }
 0x5a1   :  { %v1369_v24 = vadd.f32 1.0, %v1926_v26  ;;  %1491 = vst.msk [vmem:[%s2824_s6] sm:$0xff] %vm110_vm0, %v1472_v20 }
 0x5a2   :  { %v1928_v39 = vpop.eup %1927 }
 0x5a3   :  { %v1930_v51 = vpop.eup %1929  ;;  %v1332_v53 = vmul.f32 %v1928_v39, %v1330_v10  ;;  %1931 = vrcp.f32 %v1369_v24  ;;  %vm1337_vm10 = vweird.f32 %v1928_v39  ;;  %v1381_v40 = vand.u32 2147483648, %v1369_v24 }
 0x5a4   :  { %v1351_v42 = vmul.f32 %v1930_v51, %v1349_v0  ;;  %1933 = vtanh.f32 %v1325_v23  ;;  %vm1356_vm11 = vweird.f32 %v1930_v51  ;;  %vm1338_vm14 = vmor %vm1336_vm12, %vm1337_vm10  ;;  %vm1375_vm4 = vweird.f32 %v1369_v24 }
 0x5a5   :  { %v1333_v33 = vsub.f32 1.0, %v1332_v53  ;;  %vm1357_vm15 = vmor %vm1355_vm13, %vm1356_vm11  ;;  %v1379_v43 = vand.u32 2147483647, %v1369_v24 }
 0x5a6   :  { %v1352_v57 = vsub.f32 1.0, %v1351_v42  ;;  %v1473_v49 = vpop.f32.mrf.mxu0 }
 0x5a7   :  { %v1334_v5 = vmul.f32 %v1928_v39, %v1333_v33  ;;  %v1474_v34 = vadd.f32 %v2773_v30, %v1473_v49  ;;  %vm1380_vm6 = vcmp.eq.f32.partialorder %v1379_v43, 8.507059e+37 }
 0x5a8   :  { %v1353_v27 = vmul.f32 %v1930_v51, %v1352_v57 }
 0x5a9   :  { %v1932_v37 = vpop.eup %1931  ;;  %v1335_v38 = vadd.f32 %v1928_v39, %v1334_v5  ;;  %1492 = vst.msk [vmem:[%s2824_s6 + $0x8] sm:$0xff] %vm110_vm0, %v1474_v34 }
 0x5aa   :  { %v1354_v46 = vadd.f32 %v1930_v51, %v1353_v27  ;;  %v1371_v47 = vmul.f32 %v1932_v37, %v1369_v24  ;;  %v1934_v56 = vpop.eup %1933  ;;  %vm1376_vm3 = vweird.f32 %v1932_v37 }
 0x5ab   :  { %v1339_v55 = vsel %vm1338_vm14, %v1928_v39, %v1335_v38  ;;  %vm1377_vm5 = vmor %vm1375_vm4, %vm1376_vm3 }
 0x5ac   :  { %v1344_v1 = vsel %vm1341_vm1, %v1343_v6, %v1339_v55  ;;  %v1358_v2 = vsel %vm1357_vm15, %v1930_v51, %v1354_v46  ;;  %v1372_v7 = vsub.f32 1.0, %v1371_v47 }
 0x5ad   :  { %v1363_v9 = vsel %vm1360_vm2, %v1362_v54, %v1358_v2  ;;  %v1386_v13 = vmul.f32 %v1934_v56, %v1344_v1 }
 0x5ae   :  { %v1385_v18 = vmul.f32 %v1363_v9, %v2753_v63  ;;  %v1476_v21 = vpop.f32.mrf.mxu0  ;;  %v1373_v60 = vmul.f32 %v1932_v37, %v1372_v7  ;;  %v1382_v63 = vor.u32 1.1754944e-38, %v1381_v40 }
 0x5af   :  { %v1477_v28 = vadd.f32 %v2773_v30, %v1476_v21 }
 0x5b0   :  { %v1387_v29 = vadd.f32 %v1386_v13, %v1385_v18  ;;  %v1374_v32 = vadd.f32 %v1932_v37, %v1373_v60 }
 0x5b1   :  { %1493 = vst.msk [vmem:[%s2824_s6 + $0x10] sm:$0xff] %vm110_vm0, %v1477_v28 }
 0x5b2   :  { %1935 = vtanh.f32 %v1387_v29  ;;  %v1378_v44 = vsel %vm1377_vm5, %v1932_v37, %v1374_v32 }
 0x5b3   :  { %v1383_v62 = vsel %vm1380_vm6, %v1382_v63, %v1378_v44 }
 0x5b6   :  { %v1478_v52 = vpop.f32.mrf.mxu0 }
 0x5b7   :  { %v1479_v58 = vadd.f32 %v2773_v30, %v1478_v52 }
 0x5b8   :  { %v1936_v59 = vpop.eup %1935 }
 0x5b9   :  { %1494 = vst.msk [vmem:[%s2824_s6 + $0x18] sm:$0xff] %vm110_vm0, %v1479_v58  ;;  %v1389_v4 = vmul.f32 %v1936_v59, %v1383_v62 }
 0x5bb   :  { %v1393_v8 = vpack.c.bf16 %v1389_v4, %v2756_v22 }
 0x5bd   :  { %1485 = vmatmul.bf16.gmra.mxu0 %v1393_v8 }
 0x5be   :  { %v1481_v12 = vpop.f32.mrf.mxu0 }
 0x5bf   :  { %v1482_v3 = vadd.f32 %v2773_v30, %v1481_v12 }
 0x5c1   :  { %1495 = vst.msk [vmem:[%s2824_s6 + $0x20] sm:$0xff] %vm110_vm0, %v1482_v3 }
 0x5c6   :  { %v1483_v48 = vpop.f32.mrf.mxu0 }
 0x5c7   :  { %v1484_v14 = vadd.f32 %v2773_v30, %v1483_v48 }
 0x5c9   :  { %1496 = vst.msk [vmem:[%s2824_s6 + $0x28] sm:$0xff] %vm110_vm0, %v1484_v14 }
 0x63a   :  { %v1486_v11 = vpop.f32.mrf.mxu0 }
 0x63b   :  { %v1487_v22 = vadd.f32 %v2773_v30, %v1486_v11 }
 0x63d   :  { %1497 = vst.msk [vmem:[%s2824_s6 + $0x30] sm:$0xff] %vm110_vm0, %v1487_v22 }
 0x642   :  { %v1488_v36 = vpop.f32.mrf.mxu0 }
 0x643   :  { %v1489_v31 = vadd.f32 %v2773_v30, %v1488_v36 }
 0x645   :  { %1498 = vst.msk [vmem:[%s2824_s6 + $0x38] sm:$0xff] %vm110_vm0, %v1489_v31 }

</bundles_post_ra>
